<compile_context>
chip_gen: v6e
topology: v6e:2x2x1
jax: 0.10.0
libtpu: 0.0.40
codegen_flags: <defaults>
</compile_context>

<pallas_src>
import functools

import numpy as np
import jax
import jax.numpy as jnp
from jax import lax
from jax.experimental import pallas as pl
from jax.experimental.pallas import tpu as pltpu


def _round_up(a, m):
    return (a + m - 1) // m * m


def _make_conv_stats_kernel(tile_m, rows, cout):
    """Kernel: one im2col matmul tile + per-tile partial BN statistics.

    x_ref:     (tile_m, 9*Cin)   im2col rows for this M tile
    w_ref:     (9*Cin, Cout)     conv weights, (kh, kw, cin) -> rows
    b_ref:     (1, Cout)         conv bias
    out_ref:   (tile_m, Cout)    conv output tile (lane-dense, Cout on lanes)
    stats_ref: (1, 8, Cout)      row 0 = partial sum, row 1 = partial sum-of-squares
    """
    need_mask = (rows % tile_m) != 0

    def kernel(x_ref, w_ref, b_ref, out_ref, stats_ref):
        # Single K=9*Cin matmul on the MXU, f32 accumulation.
        conv = jnp.dot(x_ref[...], w_ref[...],
                       preferred_element_type=jnp.float32)
        conv = conv + b_ref[...]                      # (tile_m, Cout)
        out_ref[...] = conv.astype(out_ref.dtype)

        # Mask out zero-padded rows (only present if rows % tile_m != 0) so
        # they do not pollute the batch-norm statistics.
        if need_mask:
            row0 = pl.program_id(0) * tile_m
            ridx = row0 + lax.broadcasted_iota(jnp.int32, (tile_m, 1), 0)
            conv_s = jnp.where(ridx < rows, conv, 0.0)
        else:
            conv_s = conv

        ssum = jnp.sum(conv_s, axis=0, keepdims=True)            # (1, Cout)
        ssq = jnp.sum(conv_s * conv_s, axis=0, keepdims=True)    # (1, Cout)
        # Build a full (8, Cout) sublane tile so the store is unmasked.
        pad = jnp.zeros((6, cout), jnp.float32)
        stats_ref[...] = jnp.concatenate([ssum, ssq, pad], axis=0)[None]

    return kernel


def fuse_block_forward(x, y, w, b, gamma, beta, eps=1e-5,
                       matmul_dtype=jnp.float32):
    """x: (N, C1, H, W), y: (N, C2, H, W) in NCHW (PyTorch convention).

    Returns (N, 256, H, W), matching
      F.relu(BatchNorm2d(Conv2d(cat([x, y], 1), 256, 3, padding=1)))
    with BatchNorm in training mode (biased batch statistics).

    `matmul_dtype=jnp.bfloat16` halves matmul-input DMA bytes and runs the
    v6e/v7x MXU at full rate (accumulation stays f32); default f32 for
    bit-accuracy of the demo check.
    """
    N, C1, H, W = x.shape
    C2 = y.shape[1]
    Cin = C1 + C2
    Cout = w.shape[0]
    K = 9 * Cin

    # ---- Glue (plain jnp, fused by XLA): concat -> NHWC -> pad -> im2col ----
    xy = jnp.concatenate([x, y], axis=1)                  # (N, Cin, H, W)
    xnhwc = jnp.transpose(xy, (0, 2, 3, 1))               # (N, H, W, Cin)
    xpad = jnp.pad(xnhwc, ((0, 0), (1, 1), (1, 1), (0, 0)))
    patches = [xpad[:, kh:kh + H, kw:kw + W, :]
               for kh in range(3) for kw in range(3)]     # 9 x (N, H, W, Cin)
    im2col = jnp.concatenate(patches, axis=-1).reshape(N * H * W, K)
    im2col = im2col.astype(matmul_dtype)

    # weight (Cout, Cin, 3, 3) -> (3, 3, Cin, Cout) -> (9*Cin, Cout)
    w_r = jnp.transpose(w, (2, 3, 1, 0)).reshape(K, Cout).astype(matmul_dtype)
    b_r = b.reshape(1, Cout).astype(jnp.float32)

    # ---- M tiling (batch folded into the matmul M dimension) ----
    rows = N * H * W
    tile_m = min(1024, _round_up(rows, 8))
    padded_rows = _round_up(rows, tile_m)
    n_tiles = padded_rows // tile_m
    if padded_rows != rows:
        im2col = jnp.pad(im2col, ((0, padded_rows - rows), (0, 0)))

    kernel = _make_conv_stats_kernel(tile_m, rows, Cout)

    conv_out, stats = pl.pallas_call(
        kernel,
        out_shape=(
            jax.ShapeDtypeStruct((padded_rows, Cout), jnp.float32),
            jax.ShapeDtypeStruct((n_tiles, 8, Cout), jnp.float32),
        ),
        grid_spec=pltpu.PrefetchScalarGridSpec(
            num_scalar_prefetch=0,
            grid=(n_tiles,),
            in_specs=[
                pl.BlockSpec((tile_m, K), lambda m: (m, 0)),
                pl.BlockSpec((K, Cout), lambda m: (0, 0)),   # weight stays resident
                pl.BlockSpec((1, Cout), lambda m: (0, 0)),
            ],
            out_specs=(
                pl.BlockSpec((tile_m, Cout), lambda m: (m, 0)),
                pl.BlockSpec((1, 8, Cout), lambda m: (m, 0, 0)),
            ),
        ),
        compiler_params=pltpu.CompilerParams(
            dimension_semantics=("parallel",),   # no cross-step accumulator
            vmem_limit_bytes=64 * 1024 * 1024,
        ),
    )(im2col, w_r, b_r)

    # ---- Finish BN statistics (tiny Cout-wide math) in plain JAX ----
    ch_sum = jnp.sum(stats[:, 0, :], axis=0)               # (Cout,)
    ch_sq = jnp.sum(stats[:, 1, :], axis=0)                # (Cout,)
    count = float(rows)
    mean = ch_sum / count
    # NOTE: E[x^2]-E[x]^2 is fine at this scale; for trained weights with a
    # large conv-output mean a two-pass/Welford variance would be safer.
    var = ch_sq / count - mean * mean                       # biased (train-mode BN)
    invstd = lax.rsqrt(var + eps)
    scale = gamma * invstd
    shift = beta - mean * scale

    # ---- BN apply + ReLU fused (by XLA) into the layout change ----
    conv_valid = conv_out[:rows]                            # (rows, Cout)
    out_flat = jnp.maximum(conv_valid * scale[None, :] + shift[None, :], 0.0)
    out_nhwc = out_flat.reshape(N, H, W, Cout)
    # Keep NCHW to match the PyTorch module; drop this transpose if the
    # downstream consumer accepts NHWC (lane-dense Cout=256 layout).
    return jnp.transpose(out_nhwc, (0, 3, 1, 2))


def reference_forward(x, y, w, b, gamma, beta, eps=1e-5):
    """Pure-JAX reference (NCHW) mirroring the PyTorch forward in train mode."""
    xy = jnp.concatenate([x, y], axis=1)
    conv = lax.conv_general_dilated(
        xy, w, window_strides=(1, 1), padding=((1, 1), (1, 1)),
        dimension_numbers=("NCHW", "OIHW", "NCHW"))
    conv = conv + b.reshape(1, -1, 1, 1)
    mean = jnp.mean(conv, axis=(0, 2, 3), keepdims=True)
    var = jnp.mean((conv - mean) ** 2, axis=(0, 2, 3), keepdims=True)
    bn = (conv - mean) / jnp.sqrt(var + eps)
    bn = bn * gamma.reshape(1, -1, 1, 1) + beta.reshape(1, -1, 1, 1)
    return jnp.maximum(bn, 0.0)


if __name__ == "__main__":
    key = jax.random.PRNGKey(0)
    k_x, k_y, k_w = jax.random.split(key, 3)

    N, C1, C2, H, W = 2, 4, 4, 16, 16
    Cin, Cout = C1 + C2, 256

    x = jax.random.normal(k_x, (N, C1, H, W), dtype=jnp.float32)
    y = jax.random.normal(k_y, (N, C2, H, W), dtype=jnp.float32)

    # Deterministic parameter init, mirroring the PyTorch module's initialize():
    #   Conv2d: kaiming_normal_(fan_in, relu) -> std = sqrt(2 / (Cin*3*3)), bias = 0
    #   BatchNorm2d: weight = 1, bias = 0
    fan_in = Cin * 3 * 3
    w = jax.random.normal(k_w, (Cout, Cin, 3, 3), dtype=jnp.float32) * np.sqrt(2.0 / fan_in)
    b = jnp.zeros((Cout,), jnp.float32)
    gamma = jnp.ones((Cout,), jnp.float32)
    beta = jnp.zeros((Cout,), jnp.float32)

    fwd = jax.jit(functools.partial(fuse_block_forward, eps=1e-5))
    out = jax.block_until_ready(fwd(x, y, w, b, gamma, beta))

    ref = jax.block_until_ready(reference_forward(x, y, w, b, gamma, beta))
    np.testing.assert_allclose(np.asarray(out), np.asarray(ref), rtol=1e-2, atol=1e-2)

    assert out.shape == (N, Cout, H, W)
    print("KERNEL_OK")
</pallas_src>

<mosaic_0001>
module attributes {stable_mosaic.version = 11 : i64} {
  func.func @kernel(%arg0: i32, %arg1: memref<512x72xf32, #tpu.memory_space<vmem>>, %arg2: memref<72x256xf32, #tpu.memory_space<vmem>>, %arg3: memref<1x256xf32, #tpu.memory_space<vmem>>, %arg4: memref<512x256xf32, #tpu.memory_space<vmem>>, %arg5: memref<1x8x256xf32, #tpu.memory_space<vmem>>) attributes {dimension_semantics = [#tpu.dimension_semantics<parallel>], iteration_bounds = array<i64: 1>, scalar_prefetch = 0 : i64, scratch_operands = 0 : i64, tpu.core_type = #tpu.core_type<tc>, window_params = [{transform_indices = @transform_0, window_bounds = array<i64: 512, 72>}, {pipeline_mode = #tpu.pipeline_mode<synchronous>, transform_indices = @transform_1, window_bounds = array<i64: 72, 256>}, {pipeline_mode = #tpu.pipeline_mode<synchronous>, transform_indices = @transform_2, window_bounds = array<i64: 1, 256>}, {transform_indices = @transform_3, window_bounds = array<i64: 512, 256>}, {transform_indices = @transform_4, window_bounds = array<i64: 1, 8, 256>}]} {
    %c0 = arith.constant 0 : index
    %c0_0 = arith.constant 0 : index
    %0 = vector.load %arg1[%c0, %c0_0] : memref<512x72xf32, #tpu.memory_space<vmem>>, vector<512x72xf32>
    %c0_1 = arith.constant 0 : index
    %c0_2 = arith.constant 0 : index
    %1 = vector.load %arg2[%c0_1, %c0_2] : memref<72x256xf32, #tpu.memory_space<vmem>>, vector<72x256xf32>
    %cst = arith.constant dense<0.000000e+00> : vector<512x256xf32>
    %2 = tpu.matmul %0, %1, %cst {dimension_numbers = #tpu.dot_dimension_numbers<[1], [0], [0], [1], [0, 0, 1, 1], [], []>} : vector<512x72xf32>, vector<72x256xf32>, vector<512x256xf32> -> vector<512x256xf32>
    %c0_3 = arith.constant 0 : index
    %c0_4 = arith.constant 0 : index
    %3 = vector.load %arg3[%c0_3, %c0_4] : memref<1x256xf32, #tpu.memory_space<vmem>>, vector<1x256xf32>
    %4 = vector.broadcast %3 : vector<1x256xf32> to vector<512x256xf32>
    %5 = arith.addf %2, %4 : vector<512x256xf32>
    %c0_5 = arith.constant 0 : index
    %c0_6 = arith.constant 0 : index
    %6 = vector.load %arg4[%c0_5, %c0_6] : memref<512x256xf32, #tpu.memory_space<vmem>>, vector<512x256xf32>
    tpu.vector_store %arg4[%c0_5, %c0_6], %5 {strides = array<i32>} : memref<512x256xf32, #tpu.memory_space<vmem>>, vector<512x256xf32>,
    %cst_7 = arith.constant dense<0.000000e+00> : vector<256xf32>
    %7 = vector.multi_reduction <add>, %5, %cst_7 [0] : vector<512x256xf32> to vector<256xf32>
    %8 = vector.shape_cast %7 : vector<256xf32> to vector<1x256xf32>
    %9 = arith.mulf %5, %5 : vector<512x256xf32>
    %cst_8 = arith.constant dense<0.000000e+00> : vector<256xf32>
    %10 = vector.multi_reduction <add>, %9, %cst_8 [0] : vector<512x256xf32> to vector<256xf32>
    %11 = vector.shape_cast %10 : vector<256xf32> to vector<1x256xf32>
    %cst_9 = arith.constant 0.000000e+00 : f32
    %12 = vector.broadcast %cst_9 : f32 to vector<6x256xf32>
    %13 = tpu.concatenate %8, %11, %12 in 0 : vector<1x256xf32>, vector<1x256xf32>, vector<6x256xf32> -> vector<8x256xf32>
    %14 = vector.shape_cast %13 : vector<8x256xf32> to vector<1x8x256xf32>
    %c0_10 = arith.constant 0 : index
    %c0_11 = arith.constant 0 : index
    %c0_12 = arith.constant 0 : index
    %15 = vector.load %arg5[%c0_10, %c0_11, %c0_12] : memref<1x8x256xf32, #tpu.memory_space<vmem>>, vector<1x8x256xf32>
    tpu.vector_store %arg5[%c0_10, %c0_11, %c0_12], %14 {strides = array<i32>} : memref<1x8x256xf32, #tpu.memory_space<vmem>>, vector<1x8x256xf32>,
    return
  }
  func.func @transform_0(%arg0: i32) -> (i32, i32) {
    %c0_i32 = arith.constant 0 : i32
    %c0_i32_0 = arith.constant 0 : i32
    return %arg0, %c0_i32 : i32, i32
  }
  func.func @transform_1(%arg0: i32) -> (i32, i32) {
    %c0_i32 = arith.constant 0 : i32
    %c0_i32_0 = arith.constant 0 : i32
    %c0_i32_1 = arith.constant 0 : i32
    return %c0_i32, %c0_i32_0 : i32, i32
  }
  func.func @transform_2(%arg0: i32) -> (i32, i32) {
    %c0_i32 = arith.constant 0 : i32
    %c0_i32_0 = arith.constant 0 : i32
    %c0_i32_1 = arith.constant 0 : i32
    return %c0_i32, %c0_i32_0 : i32, i32
  }
  func.func @transform_3(%arg0: i32) -> (i32, i32) {
    %c0_i32 = arith.constant 0 : i32
    %c0_i32_0 = arith.constant 0 : i32
    return %arg0, %c0_i32 : i32, i32
  }
  func.func @transform_4(%arg0: i32) -> (i32, i32, i32) {
    %c0_i32 = arith.constant 0 : i32
    %c0_i32_0 = arith.constant 0 : i32
    %c0_i32_1 = arith.constant 0 : i32
    return %arg0, %c0_i32, %c0_i32_0 : i32, i32, i32
  }
}

</mosaic_0001>

<bundles_post_ra>
// kernel: fuse_block_forward.1
= control target key start
LH: loop header
LB: loop body
LE: loop exit
PB: predicated region body
PF: predicated region fallthrough
CT: control target
= control target key end

     0   :  { %v1401_v3 = vmov 0.0   ;;  %vm110_vm0 = vcmask 588800   ;;  %vm1284_vm1 = vcmask 1040384   ;;  %vm1287_vm2 = vcmask 1041408   ;;  %s2990_s1 = inlined_call_operand.vmem [shape: f32[72,256], index: 1, kind: input, shape index: {}]   ;;  %s2991_s0 = inlined_call_operand.vmem [shape: f32[512,72], index: 0, kind: input, shape index: {}]   ;;  %s2992_s2 = inlined_call_operand.vmem [shape: f32[1,256], index: 2, kind: input, shape index: {}]   ;;  %s2993_s3 = inlined_call_operand.vmem [shape: f32[512,256], index: 3, kind: output, shape index: {0}]   ;;  %s2994_s4 = inlined_call_operand.vmem [shape: f32[1,8,256], index: 4, kind: output, shape index: {1}]  }
   0x1   :  { %v97_v0 = vld [vmem:[%s2990_s1 + $0x88] sm:$0xff]  ;;  %v96_v1 = vld [vmem:[%s2990_s1 + $0x80] sm:$0xff]  ;;  %v95_v2 = vld [vmem:[%s2990_s1 + $0x78] sm:$0xff]  ;;  %367 = vmatprep.mubr.f32.mxu0 %v1401_v3  ;;  %559 = vmatprep.mubr.f32.mxu1 %v1401_v3 }
   0x2   :  { %317 = vmatprep.subr.mxu0 %v97_v0  ;;  %v94_v4 = vld [vmem:[%s2990_s1 + $0x70] sm:$0xff]  ;;  %1364 = vmatprep.subr.mxu1 %v97_v0  ;;  %v93_v5 = vld [vmem:[%s2990_s1 + $0x68] sm:$0xff]  ;;  %v92_v6 = vld [vmem:[%s2990_s1 + $0x60] sm:$0xff] }
   0x3   :  { %318 = vmatpush1.msra.mxu0 %v96_v1  ;;  %1373 = vmatpush1.msra.mxu1 %v96_v1  ;;  %v91_v7 = vld [vmem:[%s2990_s1 + $0x58] sm:$0xff]  ;;  %v90_v8 = vld [vmem:[%s2990_s1 + $0x50] sm:$0xff]  ;;  %v89_v9 = vld [vmem:[%s2990_s1 + $0x48] sm:$0xff] }
   0x4   :  { %319 = vmatprep.subr.mxu0 %v95_v2  ;;  %1365 = vmatprep.subr.mxu1 %v95_v2  ;;  %v88_v10 = vld [vmem:[%s2990_s1 + $0x40] sm:$0xff]  ;;  %v87_v11 = vld [vmem:[%s2990_s1 + $0x38] sm:$0xff]  ;;  %v86_v12 = vld [vmem:[%s2990_s1 + $0x30] sm:$0xff] }
   0x5   :  { %320 = vmatpush1.msra.mxu0 %v94_v4  ;;  %1374 = vmatpush1.msra.mxu1 %v94_v4  ;;  %v85_v13 = vld [vmem:[%s2990_s1 + $0x28] sm:$0xff]  ;;  %v84_v14 = vld [vmem:[%s2990_s1 + $0x20] sm:$0xff]  ;;  %v83_v15 = vld [vmem:[%s2990_s1 + $0x18] sm:$0xff] }
   0x6   :  { %321 = vmatprep.subr.mxu0 %v93_v5  ;;  %1366 = vmatprep.subr.mxu1 %v93_v5  ;;  %v82_v16 = vld [vmem:[%s2990_s1 + $0x10] sm:$0xff]  ;;  %v81_v17 = vld [vmem:[%s2990_s1 + $0x8] sm:$0xff]  ;;  %v80_v18 = vld [vmem:[%s2990_s1] sm:$0xff] }
   0x7   :  { %322 = vmatpush1.msra.mxu0 %v92_v6  ;;  %1375 = vmatpush1.msra.mxu1 %v92_v6  ;;  %v16_v19 = vld [vmem:[%s2991_s0] sm:$0xff]  ;;  %v17_v21 = vld [vmem:[%s2991_s0 + $0x8] sm:$0xff]  ;;  %v18_v23 = vld [vmem:[%s2991_s0 + $0x10] sm:$0xff] }
   0x8   :  { %323 = vmatprep.subr.mxu0 %v91_v7  ;;  %1367 = vmatprep.subr.mxu1 %v91_v7  ;;  %v48_v20 = vld [vmem:[%s2991_s0 + $0x100] sm:$0xff]  ;;  %v49_v22 = vld [vmem:[%s2991_s0 + $0x108] sm:$0xff]  ;;  %v50_v24 = vld [vmem:[%s2991_s0 + $0x110] sm:$0xff] }
   0x9   :  { %324 = vmatpush1.msra.mxu0 %v90_v8  ;;  %1376 = vmatpush1.msra.mxu1 %v90_v8  ;;  %v19_v25 = vld [vmem:[%s2991_s0 + $0x18] sm:$0xff]  ;;  %v20_v27 = vld [vmem:[%s2991_s0 + $0x20] sm:$0xff]  ;;  %v21_v29 = vld [vmem:[%s2991_s0 + $0x28] sm:$0xff] }
   0xa   :  { %325 = vmatprep.subr.mxu0 %v89_v9  ;;  %1368 = vmatprep.subr.mxu1 %v89_v9  ;;  %v51_v26 = vld [vmem:[%s2991_s0 + $0x118] sm:$0xff]  ;;  %v52_v28 = vld [vmem:[%s2991_s0 + $0x120] sm:$0xff]  ;;  %v53_v30 = vld [vmem:[%s2991_s0 + $0x128] sm:$0xff] }
   0xb   :  { %326 = vmatpush1.msra.mxu0 %v88_v10  ;;  %1377 = vmatpush1.msra.mxu1 %v88_v10  ;;  %v22_v31 = vld [vmem:[%s2991_s0 + $0x30] sm:$0xff]  ;;  %v23_v33 = vld [vmem:[%s2991_s0 + $0x38] sm:$0xff]  ;;  %v24_v35 = vld [vmem:[%s2991_s0 + $0x40] sm:$0xff] }
   0xc   :  { %327 = vmatprep.subr.mxu0 %v87_v11  ;;  %1369 = vmatprep.subr.mxu1 %v87_v11  ;;  %v54_v32 = vld [vmem:[%s2991_s0 + $0x130] sm:$0xff]  ;;  %v55_v34 = vld [vmem:[%s2991_s0 + $0x138] sm:$0xff]  ;;  %v56_v36 = vld [vmem:[%s2991_s0 + $0x140] sm:$0xff] }
   0xd   :  { %328 = vmatpush1.msra.mxu0 %v86_v12  ;;  %1378 = vmatpush1.msra.mxu1 %v86_v12  ;;  %v25_v37 = vld [vmem:[%s2991_s0 + $0x48] sm:$0xff]  ;;  %v26_v39 = vld [vmem:[%s2991_s0 + $0x50] sm:$0xff]  ;;  %v27_v41 = vld [vmem:[%s2991_s0 + $0x58] sm:$0xff] }
   0xe   :  { %329 = vmatprep.subr.mxu0 %v85_v13  ;;  %1370 = vmatprep.subr.mxu1 %v85_v13  ;;  %v57_v38 = vld [vmem:[%s2991_s0 + $0x148] sm:$0xff]  ;;  %v58_v40 = vld [vmem:[%s2991_s0 + $0x150] sm:$0xff]  ;;  %v59_v42 = vld [vmem:[%s2991_s0 + $0x158] sm:$0xff] }
   0xf   :  { %330 = vmatpush1.msra.mxu0 %v84_v14  ;;  %1379 = vmatpush1.msra.mxu1 %v84_v14  ;;  %v28_v43 = vld [vmem:[%s2991_s0 + $0x60] sm:$0xff]  ;;  %v29_v45 = vld [vmem:[%s2991_s0 + $0x68] sm:$0xff]  ;;  %v30_v47 = vld [vmem:[%s2991_s0 + $0x70] sm:$0xff] }
  0x10   :  { %331 = vmatprep.subr.mxu0 %v83_v15  ;;  %1371 = vmatprep.subr.mxu1 %v83_v15  ;;  %v60_v44 = vld [vmem:[%s2991_s0 + $0x160] sm:$0xff]  ;;  %v61_v46 = vld [vmem:[%s2991_s0 + $0x168] sm:$0xff]  ;;  %v62_v48 = vld [vmem:[%s2991_s0 + $0x170] sm:$0xff] }
  0x11   :  { %332 = vmatpush1.msra.mxu0 %v82_v16  ;;  %1380 = vmatpush1.msra.mxu1 %v82_v16  ;;  %v31_v49 = vld [vmem:[%s2991_s0 + $0x78] sm:$0xff]  ;;  %v32_v51 = vld [vmem:[%s2991_s0 + $0x80] sm:$0xff]  ;;  %v33_v53 = vld [vmem:[%s2991_s0 + $0x88] sm:$0xff] }
  0x12   :  { %333 = vmatprep.subr.mxu0 %v81_v17  ;;  %1372 = vmatprep.subr.mxu1 %v81_v17  ;;  %v63_v50 = vld [vmem:[%s2991_s0 + $0x178] sm:$0xff]  ;;  %v64_v52 = vld [vmem:[%s2991_s0 + $0x180] sm:$0xff]  ;;  %v65_v54 = vld [vmem:[%s2991_s0 + $0x188] sm:$0xff] }
  0x13   :  { %334 = vmatpush1.msra.mxu0 %v80_v18  ;;  %1381 = vmatpush1.msra.mxu1 %v80_v18  ;;  %v34_v55 = vld [vmem:[%s2991_s0 + $0x90] sm:$0xff]  ;;  %v35_v57 = vld [vmem:[%s2991_s0 + $0x98] sm:$0xff]  ;;  %v36_v59 = vld [vmem:[%s2991_s0 + $0xa0] sm:$0xff] }
  0x14   :  { %1300 = vmatmul.mubr.msk.f32.vlgmr.msra.gmra.mxu0 %vm110_vm0, %v16_v19  ;;  %1332 = vmatmul.mubr.msk.f32.vlgmr.msra.gmra.mxu1 %vm110_vm0, %v48_v20  ;;  %v66_v56 = vld [vmem:[%s2991_s0 + $0x190] sm:$0xff]  ;;  %v67_v58 = vld [vmem:[%s2991_s0 + $0x198] sm:$0xff]  ;;  %v68_v60 = vld [vmem:[%s2991_s0 + $0x1a0] sm:$0xff]  ;;  %v100_v20 = vlaneseq }
  0x15   :  { %373 = vmatprep.mubr.f32.mxu0 %v1401_v3  ;;  %565 = vmatprep.mubr.f32.mxu1 %v1401_v3  ;;  %v37_v61 = vld [vmem:[%s2991_s0 + $0xa8] sm:$0xff]  ;;  %v38_v63 = vld [vmem:[%s2991_s0 + $0xb0] sm:$0xff]  ;;  %v39_v1 = vld [vmem:[%s2991_s0 + $0xb8] sm:$0xff] }
  0x16   :  { %v69_v62 = vld [vmem:[%s2991_s0 + $0x1a8] sm:$0xff]  ;;  %v70_v0 = vld [vmem:[%s2991_s0 + $0x1b0] sm:$0xff]  ;;  %v71_v2 = vld [vmem:[%s2991_s0 + $0x1b8] sm:$0xff] }
  0x17   :  { %v40_v4 = vld [vmem:[%s2991_s0 + $0xc0] sm:$0xff]  ;;  %v41_v6 = vld [vmem:[%s2991_s0 + $0xc8] sm:$0xff]  ;;  %v42_v8 = vld [vmem:[%s2991_s0 + $0xd0] sm:$0xff] }
  0x18   :  { %1301 = vmatmul.mubr.msk.f32.gmra.mxu0 %vm110_vm0, %v17_v21  ;;  %1333 = vmatmul.mubr.msk.f32.gmra.mxu1 %vm110_vm0, %v49_v22  ;;  %v72_v5 = vld [vmem:[%s2991_s0 + $0x1c0] sm:$0xff]  ;;  %v73_v7 = vld [vmem:[%s2991_s0 + $0x1c8] sm:$0xff]  ;;  %v74_v9 = vld [vmem:[%s2991_s0 + $0x1d0] sm:$0xff]  ;;  %v101_v21 = vshrl.u32 %v100_v20, 7 }
  0x19   :  { %379 = vmatprep.mubr.f32.mxu0 %v1401_v3  ;;  %571 = vmatprep.mubr.f32.mxu1 %v1401_v3  ;;  %v43_v10 = vld [vmem:[%s2991_s0 + $0xd8] sm:$0xff]  ;;  %v44_v12 = vld [vmem:[%s2991_s0 + $0xe0] sm:$0xff]  ;;  %v45_v14 = vld [vmem:[%s2991_s0 + $0xe8] sm:$0xff] }
  0x1a   :  { %v75_v11 = vld [vmem:[%s2991_s0 + $0x1d8] sm:$0xff]  ;;  %v76_v13 = vld [vmem:[%s2991_s0 + $0x1e0] sm:$0xff]  ;;  %v77_v15 = vld [vmem:[%s2991_s0 + $0x1e8] sm:$0xff]  ;;  %v102_v22 = vsub.s32 0, %v101_v21 }
  0x1b   :  { %v46_v16 = vld [vmem:[%s2991_s0 + $0xf0] sm:$0xff]  ;;  %v47_v18 = vld [vmem:[%s2991_s0 + $0xf8] sm:$0xff] }
  0x1c   :  { %1302 = vmatmul.mubr.msk.f32.gmra.mxu0 %vm110_vm0, %v18_v23  ;;  %1334 = vmatmul.mubr.msk.f32.gmra.mxu1 %vm110_vm0, %v50_v24  ;;  %v78_v17 = vld [vmem:[%s2991_s0 + $0x1f0] sm:$0xff]  ;;  %v79_v19 = vld [vmem:[%s2991_s0 + $0x1f8] sm:$0xff]  ;;  %v98_v23 = vld [vmem:[%s2992_s2] sm:$0x3]  ;;  %v106_v24 = vsub.s32 1, %v101_v21 }
  0x1d   :  { %385 = vmatprep.mubr.f32.mxu0 %v1401_v3  ;;  %577 = vmatprep.mubr.f32.mxu1 %v1401_v3 }
  0x20   :  { %1303 = vmatmul.mubr.msk.f32.gmra.mxu0 %vm110_vm0, %v19_v25  ;;  %1335 = vmatmul.mubr.msk.f32.gmra.mxu1 %vm110_vm0, %v51_v26  ;;  %v1804_v25 = vrot.slane %v98_v23, %v102_v22  ;;  %v1806_v26 = vrot.slane %v98_v23, %v106_v24 }
  0x21   :  { %391 = vmatprep.mubr.f32.mxu0 %v1401_v3  ;;  %583 = vmatprep.mubr.f32.mxu1 %v1401_v3 }
  0x24   :  { %1304 = vmatmul.mubr.msk.f32.gmra.mxu0 %vm110_vm0, %v20_v27  ;;  %1336 = vmatmul.mubr.msk.f32.gmra.mxu1 %vm110_vm0, %v52_v28 }
  0x25   :  { %397 = vmatprep.mubr.f32.mxu0 %v1401_v3  ;;  %589 = vmatprep.mubr.f32.mxu1 %v1401_v3 }
  0x28   :  { %1305 = vmatmul.mubr.msk.f32.gmra.mxu0 %vm110_vm0, %v21_v29  ;;  %1337 = vmatmul.mubr.msk.f32.gmra.mxu1 %vm110_vm0, %v53_v30 }
  0x29   :  { %403 = vmatprep.mubr.f32.mxu0 %v1401_v3  ;;  %595 = vmatprep.mubr.f32.mxu1 %v1401_v3 }
  0x2c   :  { %1306 = vmatmul.mubr.msk.f32.gmra.mxu0 %vm110_vm0, %v22_v31  ;;  %1338 = vmatmul.mubr.msk.f32.gmra.mxu1 %vm110_vm0, %v54_v32 }
  0x2d   :  { %409 = vmatprep.mubr.f32.mxu0 %v1401_v3  ;;  %601 = vmatprep.mubr.f32.mxu1 %v1401_v3 }
  0x30   :  { %1307 = vmatmul.mubr.msk.f32.gmra.mxu0 %vm110_vm0, %v23_v33  ;;  %1339 = vmatmul.mubr.msk.f32.gmra.mxu1 %vm110_vm0, %v55_v34 }
  0x31   :  { %415 = vmatprep.mubr.f32.mxu0 %v1401_v3  ;;  %607 = vmatprep.mubr.f32.mxu1 %v1401_v3 }
  0x34   :  { %1308 = vmatmul.mubr.msk.f32.gmra.mxu0 %vm110_vm0, %v24_v35  ;;  %1340 = vmatmul.mubr.msk.f32.gmra.mxu1 %vm110_vm0, %v56_v36 }
  0x35   :  { %421 = vmatprep.mubr.f32.mxu0 %v1401_v3  ;;  %613 = vmatprep.mubr.f32.mxu1 %v1401_v3 }
  0x38   :  { %1309 = vmatmul.mubr.msk.f32.gmra.mxu0 %vm110_vm0, %v25_v37  ;;  %1341 = vmatmul.mubr.msk.f32.gmra.mxu1 %vm110_vm0, %v57_v38 }
  0x39   :  { %427 = vmatprep.mubr.f32.mxu0 %v1401_v3  ;;  %619 = vmatprep.mubr.f32.mxu1 %v1401_v3 }
  0x3c   :  { %1310 = vmatmul.mubr.msk.f32.gmra.mxu0 %vm110_vm0, %v26_v39  ;;  %1342 = vmatmul.mubr.msk.f32.gmra.mxu1 %vm110_vm0, %v58_v40 }
  0x3d   :  { %433 = vmatprep.mubr.f32.mxu0 %v1401_v3  ;;  %625 = vmatprep.mubr.f32.mxu1 %v1401_v3 }
  0x40   :  { %1311 = vmatmul.mubr.msk.f32.gmra.mxu0 %vm110_vm0, %v27_v41  ;;  %1343 = vmatmul.mubr.msk.f32.gmra.mxu1 %vm110_vm0, %v59_v42 }
  0x41   :  { %439 = vmatprep.mubr.f32.mxu0 %v1401_v3  ;;  %631 = vmatprep.mubr.f32.mxu1 %v1401_v3 }
  0x44   :  { %1312 = vmatmul.mubr.msk.f32.gmra.mxu0 %vm110_vm0, %v28_v43  ;;  %1344 = vmatmul.mubr.msk.f32.gmra.mxu1 %vm110_vm0, %v60_v44 }
  0x45   :  { %445 = vmatprep.mubr.f32.mxu0 %v1401_v3  ;;  %637 = vmatprep.mubr.f32.mxu1 %v1401_v3 }
  0x48   :  { %1313 = vmatmul.mubr.msk.f32.gmra.mxu0 %vm110_vm0, %v29_v45  ;;  %1345 = vmatmul.mubr.msk.f32.gmra.mxu1 %vm110_vm0, %v61_v46 }
  0x49   :  { %451 = vmatprep.mubr.f32.mxu0 %v1401_v3  ;;  %643 = vmatprep.mubr.f32.mxu1 %v1401_v3 }
  0x4c   :  { %1314 = vmatmul.mubr.msk.f32.gmra.mxu0 %vm110_vm0, %v30_v47  ;;  %1346 = vmatmul.mubr.msk.f32.gmra.mxu1 %vm110_vm0, %v62_v48 }
  0x4d   :  { %457 = vmatprep.mubr.f32.mxu0 %v1401_v3  ;;  %649 = vmatprep.mubr.f32.mxu1 %v1401_v3 }
  0x50   :  { %1315 = vmatmul.mubr.msk.f32.gmra.mxu0 %vm110_vm0, %v31_v49  ;;  %1347 = vmatmul.mubr.msk.f32.gmra.mxu1 %vm110_vm0, %v63_v50 }
  0x51   :  { %463 = vmatprep.mubr.f32.mxu0 %v1401_v3  ;;  %655 = vmatprep.mubr.f32.mxu1 %v1401_v3 }
  0x54   :  { %1316 = vmatmul.mubr.msk.f32.gmra.mxu0 %vm110_vm0, %v32_v51  ;;  %1348 = vmatmul.mubr.msk.f32.gmra.mxu1 %vm110_vm0, %v64_v52 }
  0x55   :  { %469 = vmatprep.mubr.f32.mxu0 %v1401_v3  ;;  %661 = vmatprep.mubr.f32.mxu1 %v1401_v3 }
  0x58   :  { %1317 = vmatmul.mubr.msk.f32.gmra.mxu0 %vm110_vm0, %v33_v53  ;;  %1349 = vmatmul.mubr.msk.f32.gmra.mxu1 %vm110_vm0, %v65_v54 }
  0x59   :  { %475 = vmatprep.mubr.f32.mxu0 %v1401_v3  ;;  %667 = vmatprep.mubr.f32.mxu1 %v1401_v3 }
  0x5c   :  { %1318 = vmatmul.mubr.msk.f32.gmra.mxu0 %vm110_vm0, %v34_v55  ;;  %1350 = vmatmul.mubr.msk.f32.gmra.mxu1 %vm110_vm0, %v66_v56 }
  0x5d   :  { %481 = vmatprep.mubr.f32.mxu0 %v1401_v3  ;;  %673 = vmatprep.mubr.f32.mxu1 %v1401_v3 }
  0x60   :  { %1319 = vmatmul.mubr.msk.f32.gmra.mxu0 %vm110_vm0, %v35_v57  ;;  %1351 = vmatmul.mubr.msk.f32.gmra.mxu1 %vm110_vm0, %v67_v58 }
  0x61   :  { %487 = vmatprep.mubr.f32.mxu0 %v1401_v3  ;;  %679 = vmatprep.mubr.f32.mxu1 %v1401_v3 }
  0x64   :  { %1320 = vmatmul.mubr.msk.f32.gmra.mxu0 %vm110_vm0, %v36_v59  ;;  %1352 = vmatmul.mubr.msk.f32.gmra.mxu1 %vm110_vm0, %v68_v60 }
  0x65   :  { %493 = vmatprep.mubr.f32.mxu0 %v1401_v3  ;;  %685 = vmatprep.mubr.f32.mxu1 %v1401_v3 }
  0x68   :  { %1321 = vmatmul.mubr.msk.f32.gmra.mxu0 %vm110_vm0, %v37_v61  ;;  %1353 = vmatmul.mubr.msk.f32.gmra.mxu1 %vm110_vm0, %v69_v62 }
  0x69   :  { %499 = vmatprep.mubr.f32.mxu0 %v1401_v3  ;;  %691 = vmatprep.mubr.f32.mxu1 %v1401_v3 }
  0x6c   :  { %1322 = vmatmul.mubr.msk.f32.gmra.mxu0 %vm110_vm0, %v38_v63  ;;  %1354 = vmatmul.mubr.msk.f32.gmra.mxu1 %vm110_vm0, %v70_v0 }
  0x6d   :  { %505 = vmatprep.mubr.f32.mxu0 %v1401_v3  ;;  %697 = vmatprep.mubr.f32.mxu1 %v1401_v3 }
  0x70   :  { %1323 = vmatmul.mubr.msk.f32.gmra.mxu0 %vm110_vm0, %v39_v1  ;;  %1355 = vmatmul.mubr.msk.f32.gmra.mxu1 %vm110_vm0, %v71_v2 }
  0x71   :  { %511 = vmatprep.mubr.f32.mxu0 %v1401_v3  ;;  %703 = vmatprep.mubr.f32.mxu1 %v1401_v3 }
  0x74   :  { %1324 = vmatmul.mubr.msk.f32.gmra.mxu0 %vm110_vm0, %v40_v4  ;;  %1356 = vmatmul.mubr.msk.f32.gmra.mxu1 %vm110_vm0, %v72_v5 }
  0x75   :  { %517 = vmatprep.mubr.f32.mxu0 %v1401_v3  ;;  %709 = vmatprep.mubr.f32.mxu1 %v1401_v3 }
  0x78   :  { %1325 = vmatmul.mubr.msk.f32.gmra.mxu0 %vm110_vm0, %v41_v6  ;;  %1357 = vmatmul.mubr.msk.f32.gmra.mxu1 %vm110_vm0, %v73_v7 }
  0x79   :  { %523 = vmatprep.mubr.f32.mxu0 %v1401_v3  ;;  %715 = vmatprep.mubr.f32.mxu1 %v1401_v3 }
  0x7c   :  { %1326 = vmatmul.mubr.msk.f32.gmra.mxu0 %vm110_vm0, %v42_v8  ;;  %1358 = vmatmul.mubr.msk.f32.gmra.mxu1 %vm110_vm0, %v74_v9 }
  0x7d   :  { %529 = vmatprep.mubr.f32.mxu0 %v1401_v3  ;;  %721 = vmatprep.mubr.f32.mxu1 %v1401_v3 }
  0x80   :  { %1327 = vmatmul.mubr.msk.f32.gmra.mxu0 %vm110_vm0, %v43_v10  ;;  %1359 = vmatmul.mubr.msk.f32.gmra.mxu1 %vm110_vm0, %v75_v11 }
  0x81   :  { %535 = vmatprep.mubr.f32.mxu0 %v1401_v3  ;;  %727 = vmatprep.mubr.f32.mxu1 %v1401_v3 }
  0x84   :  { %1328 = vmatmul.mubr.msk.f32.gmra.mxu0 %vm110_vm0, %v44_v12  ;;  %1360 = vmatmul.mubr.msk.f32.gmra.mxu1 %vm110_vm0, %v76_v13 }
  0x85   :  { %541 = vmatprep.mubr.f32.mxu0 %v1401_v3  ;;  %733 = vmatprep.mubr.f32.mxu1 %v1401_v3 }
  0x88   :  { %1329 = vmatmul.mubr.msk.f32.gmra.mxu0 %vm110_vm0, %v45_v14  ;;  %1361 = vmatmul.mubr.msk.f32.gmra.mxu1 %vm110_vm0, %v77_v15 }
  0x89   :  { %547 = vmatprep.mubr.f32.mxu0 %v1401_v3  ;;  %739 = vmatprep.mubr.f32.mxu1 %v1401_v3 }
  0x8c   :  { %1330 = vmatmul.mubr.msk.f32.gmra.mxu0 %vm110_vm0, %v46_v16  ;;  %1362 = vmatmul.mubr.msk.f32.gmra.mxu1 %vm110_vm0, %v78_v17 }
  0x8d   :  { %553 = vmatprep.mubr.f32.mxu0 %v1401_v3  ;;  %745 = vmatprep.mubr.f32.mxu1 %v1401_v3 }
  0x90   :  { %1331 = vmatmul.mubr.msk.f32.gmra.mxu0 %vm110_vm0, %v47_v18  ;;  %1363 = vmatmul.mubr.msk.f32.gmra.mxu1 %vm110_vm0, %v79_v19 }
  0xd4   :  { %v369_v3 = vpop.f32.mrf.mxu0  ;;  %v561_v27 = vpop.f32.mrf.mxu1 }
  0xd5   :  { %v1809_v28 = vadd.f32 %v369_v3, %v1804_v25  ;;  %v562_v29 = vadd.f32 %v561_v27, %v1804_v25 }
  0xd6   :  { %v371_v30 = vpop.f32.mrf.mxu0  ;;  %v563_v31 = vpop.f32.mrf.mxu1 }
  0xd7   :  { %752 = vst [vmem:[%s2993_s3] sm:$0xff] %v1809_v28  ;;  %v1817_v32 = vadd.f32 %v371_v30, %v1806_v26  ;;  %816 = vst [vmem:[%s2993_s3 + $0x200] sm:$0xff] %v562_v29  ;;  %v564_v33 = vadd.f32 %v563_v31, %v1806_v26 }
  0xd8   :  { %v375_v34 = vpop.f32.mrf.mxu0  ;;  %v567_v35 = vpop.f32.mrf.mxu1 }
  0xd9   :  { %753 = vst [vmem:[%s2993_s3 + $0x8] sm:$0xff] %v1817_v32  ;;  %v1828_v36 = vadd.f32 %v375_v34, %v1804_v25  ;;  %817 = vst [vmem:[%s2993_s3 + $0x208] sm:$0xff] %v564_v33  ;;  %v568_v37 = vadd.f32 %v567_v35, %v1804_v25 }
  0xda   :  { %v377_v38 = vpop.f32.mrf.mxu0  ;;  %v569_v39 = vpop.f32.mrf.mxu1 }
  0xdb   :  { %754 = vst [vmem:[%s2993_s3 + $0x10] sm:$0xff] %v1828_v36  ;;  %v1839_v40 = vadd.f32 %v377_v38, %v1806_v26  ;;  %818 = vst [vmem:[%s2993_s3 + $0x210] sm:$0xff] %v568_v37  ;;  %v570_v42 = vadd.f32 %v569_v39, %v1806_v26 }
  0xdc   :  { %v381_v41 = vpop.f32.mrf.mxu0  ;;  %v573_v43 = vpop.f32.mrf.mxu1 }
  0xdd   :  { %755 = vst [vmem:[%s2993_s3 + $0x18] sm:$0xff] %v1839_v40  ;;  %v1850_v44 = vadd.f32 %v381_v41, %v1804_v25  ;;  %819 = vst [vmem:[%s2993_s3 + $0x218] sm:$0xff] %v570_v42  ;;  %v574_v46 = vadd.f32 %v573_v43, %v1804_v25 }
  0xde   :  { %v383_v45 = vpop.f32.mrf.mxu0  ;;  %v575_v47 = vpop.f32.mrf.mxu1 }
  0xdf   :  { %756 = vst [vmem:[%s2993_s3 + $0x20] sm:$0xff] %v1850_v44  ;;  %v1861_v48 = vadd.f32 %v383_v45, %v1806_v26  ;;  %820 = vst [vmem:[%s2993_s3 + $0x220] sm:$0xff] %v574_v46  ;;  %v576_v50 = vadd.f32 %v575_v47, %v1806_v26 }
  0xe0   :  { %v387_v49 = vpop.f32.mrf.mxu0  ;;  %v579_v51 = vpop.f32.mrf.mxu1 }
  0xe1   :  { %757 = vst [vmem:[%s2993_s3 + $0x28] sm:$0xff] %v1861_v48  ;;  %v1872_v52 = vadd.f32 %v387_v49, %v1804_v25  ;;  %821 = vst [vmem:[%s2993_s3 + $0x228] sm:$0xff] %v576_v50  ;;  %v580_v54 = vadd.f32 %v579_v51, %v1804_v25 }
  0xe2   :  { %v389_v53 = vpop.f32.mrf.mxu0  ;;  %v581_v55 = vpop.f32.mrf.mxu1 }
  0xe3   :  { %758 = vst [vmem:[%s2993_s3 + $0x30] sm:$0xff] %v1872_v52  ;;  %v1883_v56 = vadd.f32 %v389_v53, %v1806_v26  ;;  %822 = vst [vmem:[%s2993_s3 + $0x230] sm:$0xff] %v580_v54  ;;  %v582_v58 = vadd.f32 %v581_v55, %v1806_v26 }
  0xe4   :  { %v393_v57 = vpop.f32.mrf.mxu0  ;;  %v585_v59 = vpop.f32.mrf.mxu1 }
  0xe5   :  { %759 = vst [vmem:[%s2993_s3 + $0x38] sm:$0xff] %v1883_v56  ;;  %v1894_v60 = vadd.f32 %v393_v57, %v1804_v25  ;;  %823 = vst [vmem:[%s2993_s3 + $0x238] sm:$0xff] %v582_v58  ;;  %v586_v62 = vadd.f32 %v585_v59, %v1804_v25 }
  0xe6   :  { %v395_v61 = vpop.f32.mrf.mxu0  ;;  %v587_v63 = vpop.f32.mrf.mxu1 }
  0xe7   :  { %760 = vst [vmem:[%s2993_s3 + $0x40] sm:$0xff] %v1894_v60  ;;  %v1905_v0 = vadd.f32 %v395_v61, %v1806_v26  ;;  %824 = vst [vmem:[%s2993_s3 + $0x240] sm:$0xff] %v586_v62  ;;  %v588_v2 = vadd.f32 %v587_v63, %v1806_v26 }
  0xe8   :  { %v399_v1 = vpop.f32.mrf.mxu0  ;;  %v591_v4 = vpop.f32.mrf.mxu1 }
  0xe9   :  { %761 = vst [vmem:[%s2993_s3 + $0x48] sm:$0xff] %v1905_v0  ;;  %v1916_v5 = vadd.f32 %v399_v1, %v1804_v25  ;;  %825 = vst [vmem:[%s2993_s3 + $0x248] sm:$0xff] %v588_v2  ;;  %v592_v7 = vadd.f32 %v591_v4, %v1804_v25 }
  0xea   :  { %v401_v6 = vpop.f32.mrf.mxu0  ;;  %v593_v8 = vpop.f32.mrf.mxu1 }
  0xeb   :  { %762 = vst [vmem:[%s2993_s3 + $0x50] sm:$0xff] %v1916_v5  ;;  %v1927_v9 = vadd.f32 %v401_v6, %v1806_v26  ;;  %826 = vst [vmem:[%s2993_s3 + $0x250] sm:$0xff] %v592_v7  ;;  %v594_v11 = vadd.f32 %v593_v8, %v1806_v26 }
  0xec   :  { %v405_v10 = vpop.f32.mrf.mxu0  ;;  %v597_v12 = vpop.f32.mrf.mxu1 }
  0xed   :  { %763 = vst [vmem:[%s2993_s3 + $0x58] sm:$0xff] %v1927_v9  ;;  %v1938_v13 = vadd.f32 %v405_v10, %v1804_v25  ;;  %827 = vst [vmem:[%s2993_s3 + $0x258] sm:$0xff] %v594_v11  ;;  %v598_v15 = vadd.f32 %v597_v12, %v1804_v25 }
  0xee   :  { %v407_v14 = vpop.f32.mrf.mxu0  ;;  %v599_v16 = vpop.f32.mrf.mxu1 }
  0xef   :  { %764 = vst [vmem:[%s2993_s3 + $0x60] sm:$0xff] %v1938_v13  ;;  %v1949_v17 = vadd.f32 %v407_v14, %v1806_v26  ;;  %828 = vst [vmem:[%s2993_s3 + $0x260] sm:$0xff] %v598_v15  ;;  %v600_v19 = vadd.f32 %v599_v16, %v1806_v26 }
  0xf0   :  { %v411_v18 = vpop.f32.mrf.mxu0  ;;  %v603_v20 = vpop.f32.mrf.mxu1 }
  0xf1   :  { %765 = vst [vmem:[%s2993_s3 + $0x68] sm:$0xff] %v1949_v17  ;;  %v1960_v21 = vadd.f32 %v411_v18, %v1804_v25  ;;  %829 = vst [vmem:[%s2993_s3 + $0x268] sm:$0xff] %v600_v19  ;;  %v604_v23 = vadd.f32 %v603_v20, %v1804_v25 }
  0xf2   :  { %v413_v22 = vpop.f32.mrf.mxu0  ;;  %v605_v24 = vpop.f32.mrf.mxu1 }
  0xf3   :  { %766 = vst [vmem:[%s2993_s3 + $0x70] sm:$0xff] %v1960_v21  ;;  %v1971_v3 = vadd.f32 %v413_v22, %v1806_v26  ;;  %830 = vst [vmem:[%s2993_s3 + $0x270] sm:$0xff] %v604_v23  ;;  %v606_v29 = vadd.f32 %v605_v24, %v1806_v26 }
  0xf4   :  { %v417_v27 = vpop.f32.mrf.mxu0  ;;  %v609_v30 = vpop.f32.mrf.mxu1 }
  0xf5   :  { %767 = vst [vmem:[%s2993_s3 + $0x78] sm:$0xff] %v1971_v3  ;;  %v1982_v31 = vadd.f32 %v417_v27, %v1804_v25  ;;  %831 = vst [vmem:[%s2993_s3 + $0x278] sm:$0xff] %v606_v29  ;;  %v1988_v34 = vadd.f32 %v609_v30, %v1804_v25 }
  0xf6   :  { %v419_v33 = vpop.f32.mrf.mxu0  ;;  %v611_v35 = vpop.f32.mrf.mxu1 }
  0xf7   :  { %768 = vst [vmem:[%s2993_s3 + $0x80] sm:$0xff] %v1982_v31  ;;  %v1995_v37 = vadd.f32 %v419_v33, %v1806_v26  ;;  %832 = vst [vmem:[%s2993_s3 + $0x280] sm:$0xff] %v1988_v34  ;;  %v2002_v39 = vadd.f32 %v611_v35, %v1806_v26 }
  0xf8   :  { %v423_v38 = vpop.f32.mrf.mxu0  ;;  %v615_v41 = vpop.f32.mrf.mxu1 }
  0xf9   :  { %769 = vst [vmem:[%s2993_s3 + $0x88] sm:$0xff] %v1995_v37  ;;  %v2009_v42 = vadd.f32 %v423_v38, %v1804_v25  ;;  %833 = vst [vmem:[%s2993_s3 + $0x288] sm:$0xff] %v2002_v39  ;;  %v2016_v45 = vadd.f32 %v615_v41, %v1804_v25 }
  0xfa   :  { %v425_v43 = vpop.f32.mrf.mxu0  ;;  %v617_v46 = vpop.f32.mrf.mxu1 }
  0xfb   :  { %770 = vst [vmem:[%s2993_s3 + $0x90] sm:$0xff] %v2009_v42  ;;  %v2023_v47 = vadd.f32 %v425_v43, %v1806_v26  ;;  %834 = vst [vmem:[%s2993_s3 + $0x290] sm:$0xff] %v2016_v45  ;;  %v2030_v50 = vadd.f32 %v617_v46, %v1806_v26 }
  0xfc   :  { %v429_v49 = vpop.f32.mrf.mxu0  ;;  %v621_v51 = vpop.f32.mrf.mxu1 }
  0xfd   :  { %771 = vst [vmem:[%s2993_s3 + $0x98] sm:$0xff] %v2023_v47  ;;  %v2037_v53 = vadd.f32 %v429_v49, %v1804_v25  ;;  %835 = vst [vmem:[%s2993_s3 + $0x298] sm:$0xff] %v2030_v50  ;;  %v2044_v55 = vadd.f32 %v621_v51, %v1804_v25 }
  0xfe   :  { %v431_v54 = vpop.f32.mrf.mxu0  ;;  %v623_v57 = vpop.f32.mrf.mxu1 }
  0xff   :  { %772 = vst [vmem:[%s2993_s3 + $0xa0] sm:$0xff] %v2037_v53  ;;  %v2051_v58 = vadd.f32 %v431_v54, %v1806_v26  ;;  %836 = vst [vmem:[%s2993_s3 + $0x2a0] sm:$0xff] %v2044_v55  ;;  %v2058_v61 = vadd.f32 %v623_v57, %v1806_v26 }
 0x100   :  { %v435_v59 = vpop.f32.mrf.mxu0  ;;  %v627_v62 = vpop.f32.mrf.mxu1 }
 0x101   :  { %773 = vst [vmem:[%s2993_s3 + $0xa8] sm:$0xff] %v2051_v58  ;;  %v2065_v63 = vadd.f32 %v435_v59, %v1804_v25  ;;  %837 = vst [vmem:[%s2993_s3 + $0x2a8] sm:$0xff] %v2058_v61  ;;  %v2072_v2 = vadd.f32 %v627_v62, %v1804_v25 }
 0x102   :  { %v437_v1 = vpop.f32.mrf.mxu0  ;;  %v629_v4 = vpop.f32.mrf.mxu1 }
 0x103   :  { %774 = vst [vmem:[%s2993_s3 + $0xb0] sm:$0xff] %v2065_v63  ;;  %v2079_v6 = vadd.f32 %v437_v1, %v1806_v26  ;;  %838 = vst [vmem:[%s2993_s3 + $0x2b0] sm:$0xff] %v2072_v2  ;;  %v2086_v8 = vadd.f32 %v629_v4, %v1806_v26 }
 0x104   :  { %v441_v7 = vpop.f32.mrf.mxu0  ;;  %v633_v10 = vpop.f32.mrf.mxu1 }
 0x105   :  { %775 = vst [vmem:[%s2993_s3 + $0xb8] sm:$0xff] %v2079_v6  ;;  %v2093_v11 = vadd.f32 %v441_v7, %v1804_v25  ;;  %839 = vst [vmem:[%s2993_s3 + $0x2b8] sm:$0xff] %v2086_v8  ;;  %v2100_v14 = vadd.f32 %v633_v10, %v1804_v25  ;;  %v1020_v10 = vmul.f32 %v1828_v36, %v1828_v36 }
 0x106   :  { %v443_v12 = vpop.f32.mrf.mxu0  ;;  %v635_v15 = vpop.f32.mrf.mxu1 }
 0x107   :  { %776 = vst [vmem:[%s2993_s3 + $0xc0] sm:$0xff] %v2093_v11  ;;  %v2107_v16 = vadd.f32 %v443_v12, %v1806_v26  ;;  %840 = vst [vmem:[%s2993_s3 + $0x2c0] sm:$0xff] %v2100_v14  ;;  %v2114_v19 = vadd.f32 %v635_v15, %v1806_v26 }
 0x108   :  { %v447_v18 = vpop.f32.mrf.mxu0  ;;  %v639_v20 = vpop.f32.mrf.mxu1 }
 0x109   :  { %777 = vst [vmem:[%s2993_s3 + $0xc8] sm:$0xff] %v2107_v16  ;;  %v2121_v22 = vadd.f32 %v447_v18, %v1804_v25  ;;  %841 = vst [vmem:[%s2993_s3 + $0x2c8] sm:$0xff] %v2114_v19  ;;  %v2128_v24 = vadd.f32 %v639_v20, %v1804_v25  ;;  %v1021_v20 = vmul.f32 %v1839_v40, %v1839_v40 }
 0x10a   :  { %v449_v23 = vpop.f32.mrf.mxu0  ;;  %v641_v27 = vpop.f32.mrf.mxu1 }
 0x10b   :  { %778 = vst [vmem:[%s2993_s3 + $0xd0] sm:$0xff] %v2121_v22  ;;  %v2135_v29 = vadd.f32 %v449_v23, %v1806_v26  ;;  %842 = vst [vmem:[%s2993_s3 + $0x2d0] sm:$0xff] %v2128_v24  ;;  %v2142_v33 = vadd.f32 %v641_v27, %v1806_v26  ;;  %v1018_v27 = vmul.f32 %v1809_v28, %v1809_v28 }
 0x10c   :  { %v453_v30 = vpop.f32.mrf.mxu0  ;;  %v645_v35 = vpop.f32.mrf.mxu1 }
 0x10d   :  { %779 = vst [vmem:[%s2993_s3 + $0xd8] sm:$0xff] %v2135_v29  ;;  %v2149_v38 = vadd.f32 %v453_v30, %v1804_v25  ;;  %843 = vst [vmem:[%s2993_s3 + $0x2d8] sm:$0xff] %v2142_v33  ;;  %v2156_v43 = vadd.f32 %v645_v35, %v1804_v25  ;;  %v1022_v30 = vmul.f32 %v1850_v44, %v1850_v44 }
 0x10e   :  { %v455_v41 = vpop.f32.mrf.mxu0  ;;  %v647_v46 = vpop.f32.mrf.mxu1 }
 0x10f   :  { %780 = vst [vmem:[%s2993_s3 + $0xe0] sm:$0xff] %v2149_v38  ;;  %v2163_v49 = vadd.f32 %v455_v41, %v1806_v26  ;;  %844 = vst [vmem:[%s2993_s3 + $0x2e0] sm:$0xff] %v2156_v43  ;;  %v2170_v54 = vadd.f32 %v647_v46, %v1806_v26 }
 0x110   :  { %v459_v51 = vpop.f32.mrf.mxu0  ;;  %v651_v57 = vpop.f32.mrf.mxu1 }
 0x111   :  { %3007 = vst [vmem:[#allocation2_spill] sm:$0xff] %v2170_v54  ;;  %781 = vst [vmem:[%s2993_s3 + $0xe8] sm:$0xff] %v2163_v49  ;;  %v2177_v59 = vadd.f32 %v459_v51, %v1804_v25  ;;  %v2184_v1 = vadd.f32 %v651_v57, %v1804_v25  ;;  %v1019_v51 = vmul.f32 %v1817_v32, %v1817_v32 }
 0x112   :  { %v461_v62 = vpop.f32.mrf.mxu0  ;;  %845 = vst [vmem:[%s2993_s3 + $0x2e8] sm:$0xff] %v2170_v54  ;;  %v653_v4 = vpop.f32.mrf.mxu1  ;;  %v880_v57 = vadd.f32 %v1828_v36, %v1809_v28 }
 0x113   :  { %3008 = vst [vmem:[#allocation3_spill] sm:$0xff] %v2184_v1  ;;  %782 = vst [vmem:[%s2993_s3 + $0xf0] sm:$0xff] %v2177_v59  ;;  %v2191_v7 = vadd.f32 %v461_v62, %v1806_v26  ;;  %v2200_v15 = vadd.f32 %v653_v4, %v1806_v26  ;;  %v1023_v62 = vmul.f32 %v1861_v48, %v1861_v48 }
 0x114   :  { %v465_v12 = vpop.f32.mrf.mxu0  ;;  %846 = vst [vmem:[%s2993_s3 + $0x2f0] sm:$0xff] %v2184_v1  ;;  %v657_v18 = vpop.f32.mrf.mxu1  ;;  %v1215_v54 = vadd.f32 %v1021_v20, %v1019_v51 }
 0x115   :  { %3009 = vst [vmem:[#allocation4_spill] sm:$0xff] %v2200_v15  ;;  %783 = vst [vmem:[%s2993_s3 + $0xf8] sm:$0xff] %v2191_v7  ;;  %v2209_v23 = vadd.f32 %v465_v12, %v1804_v25  ;;  %v2220_v41 = vadd.f32 %v657_v18, %v1804_v25  ;;  %v1146_v12 = vadd.f32 %v1020_v10, %v1018_v27 }
 0x116   :  { %v467_v35 = vpop.f32.mrf.mxu0  ;;  %847 = vst [vmem:[%s2993_s3 + $0x2f8] sm:$0xff] %v2200_v15  ;;  %v659_v46 = vpop.f32.mrf.mxu1  ;;  %v949_v18 = vadd.f32 %v1839_v40, %v1817_v32  ;;  %v1024_v15 = vmul.f32 %v1872_v52, %v1872_v52  ;;  %v1025_v10 = vmul.f32 %v1883_v56, %v1883_v56 }
 0x117   :  { %784 = vst [vmem:[%s2993_s3 + $0x100] sm:$0xff] %v2209_v23  ;;  %v2233_v4 = vadd.f32 %v467_v35, %v1806_v26  ;;  %848 = vst [vmem:[%s2993_s3 + $0x300] sm:$0xff] %v2220_v41  ;;  %v2244_v28 = vadd.f32 %v659_v46, %v1806_v26  ;;  %v881_v35 = vadd.f32 %v880_v57, %v1850_v44 }
 0x118   :  { %v471_v1 = vpop.f32.mrf.mxu0  ;;  %v663_v36 = vpop.f32.mrf.mxu1  ;;  %v1147_v40 = vadd.f32 %v1146_v12, %v1022_v30  ;;  %v950_v27 = vadd.f32 %v949_v18, %v1861_v48  ;;  %v1026_v46 = vmul.f32 %v1894_v60, %v1894_v60  ;;  %v1216_v57 = vadd.f32 %v1215_v54, %v1023_v62 }
 0x119   :  { %785 = vst [vmem:[%s2993_s3 + $0x108] sm:$0xff] %v2233_v4  ;;  %v2254_v32 = vadd.f32 %v471_v1, %v1804_v25  ;;  %849 = vst [vmem:[%s2993_s3 + $0x308] sm:$0xff] %v2244_v28  ;;  %v2264_v44 = vadd.f32 %v663_v36, %v1804_v25  ;;  %v882_v1 = vadd.f32 %v881_v35, %v1872_v52 }
 0x11a   :  { %v473_v20 = vpop.f32.mrf.mxu0  ;;  %v665_v51 = vpop.f32.mrf.mxu1  ;;  %v1027_v30 = vmul.f32 %v1905_v0, %v1905_v0  ;;  %v1148_v12 = vadd.f32 %v1147_v40, %v1024_v15  ;;  %v951_v18 = vadd.f32 %v950_v27, %v1883_v56  ;;  %v1028_v36 = vmul.f32 %v1916_v5, %v1916_v5 }
 0x11b   :  { %786 = vst [vmem:[%s2993_s3 + $0x110] sm:$0xff] %v2254_v32  ;;  %v2274_v48 = vadd.f32 %v473_v20, %v1806_v26  ;;  %850 = vst [vmem:[%s2993_s3 + $0x310] sm:$0xff] %v2264_v44  ;;  %v2284_v52 = vadd.f32 %v665_v51, %v1806_v26  ;;  %v1217_v35 = vadd.f32 %v1216_v57, %v1025_v10 }
 0x11c   :  { %v477_v54 = vpop.f32.mrf.mxu0  ;;  %v669_v62 = vpop.f32.mrf.mxu1  ;;  %v883_v20 = vadd.f32 %v882_v1, %v1894_v60  ;;  %v1029_v15 = vmul.f32 %v1927_v9, %v1927_v9  ;;  %v1149_v40 = vadd.f32 %v1148_v12, %v1026_v46  ;;  %v952_v27 = vadd.f32 %v951_v18, %v1905_v0 }
 0x11d   :  { %787 = vst [vmem:[%s2993_s3 + $0x118] sm:$0xff] %v2274_v48  ;;  %v2294_v56 = vadd.f32 %v477_v54, %v1804_v25  ;;  %v1030_v51 = vmul.f32 %v1938_v13, %v1938_v13  ;;  %851 = vst [vmem:[%s2993_s3 + $0x318] sm:$0xff] %v2284_v52  ;;  %v2304_v60 = vadd.f32 %v669_v62, %v1804_v25 }
 0x11e   :  { %v479_v10 = vpop.f32.mrf.mxu0  ;;  %v671_v57 = vpop.f32.mrf.mxu1  ;;  %v1218_v1 = vadd.f32 %v1217_v35, %v1027_v30  ;;  %v884_v54 = vadd.f32 %v883_v20, %v1916_v5  ;;  %v1031_v46 = vmul.f32 %v1949_v17, %v1949_v17  ;;  %v1150_v12 = vadd.f32 %v1149_v40, %v1028_v36 }
 0x11f   :  { %788 = vst [vmem:[%s2993_s3 + $0x120] sm:$0xff] %v2294_v56  ;;  %v2314_v0 = vadd.f32 %v479_v10, %v1806_v26  ;;  %v953_v18 = vadd.f32 %v952_v27, %v1927_v9  ;;  %v1032_v62 = vmul.f32 %v1960_v21, %v1960_v21  ;;  %852 = vst [vmem:[%s2993_s3 + $0x320] sm:$0xff] %v2304_v60 }
 0x120   :  { %v483_v30 = vpop.f32.mrf.mxu0  ;;  %v2324_v5 = vadd.f32 %v671_v57, %v1806_v26  ;;  %v675_v35 = vpop.f32.mrf.mxu1  ;;  %v1219_v20 = vadd.f32 %v1218_v1, %v1029_v15  ;;  %v885_v10 = vadd.f32 %v884_v54, %v1938_v13  ;;  %v1033_v36 = vmul.f32 %v1971_v3, %v1971_v3 }
 0x121   :  { %789 = vst [vmem:[%s2993_s3 + $0x128] sm:$0xff] %v2314_v0  ;;  %v2334_v9 = vadd.f32 %v483_v30, %v1804_v25  ;;  %v1151_v40 = vadd.f32 %v1150_v12, %v1030_v51  ;;  %v954_v27 = vadd.f32 %v953_v18, %v1949_v17  ;;  %v1034_v57 = vmul.f32 %v1982_v31, %v1982_v31 }
 0x122   :  { %v485_v15 = vpop.f32.mrf.mxu0  ;;  %853 = vst [vmem:[%s2993_s3 + $0x328] sm:$0xff] %v2324_v5  ;;  %v2344_v13 = vadd.f32 %v675_v35, %v1804_v25  ;;  %v677_v1 = vpop.f32.mrf.mxu1  ;;  %v1220_v54 = vadd.f32 %v1219_v20, %v1031_v46  ;;  %v886_v30 = vadd.f32 %v885_v10, %v1960_v21  ;;  %v1035_v51 = vmul.f32 %v1995_v37, %v1995_v37 }
 0x123   :  { %790 = vst [vmem:[%s2993_s3 + $0x130] sm:$0xff] %v2334_v9  ;;  %v2354_v17 = vadd.f32 %v485_v15, %v1806_v26  ;;  %v1152_v12 = vadd.f32 %v1151_v40, %v1032_v62  ;;  %v955_v18 = vadd.f32 %v954_v27, %v1971_v3  ;;  %v1036_v35 = vmul.f32 %v2009_v42, %v2009_v42 }
 0x124   :  { %v489_v46 = vpop.f32.mrf.mxu0  ;;  %854 = vst [vmem:[%s2993_s3 + $0x330] sm:$0xff] %v2344_v13  ;;  %v2364_v21 = vadd.f32 %v677_v1, %v1806_v26  ;;  %v681_v20 = vpop.f32.mrf.mxu1  ;;  %v1221_v10 = vadd.f32 %v1220_v54, %v1033_v36  ;;  %v887_v15 = vadd.f32 %v886_v30, %v1982_v31  ;;  %v1037_v62 = vmul.f32 %v2023_v47, %v2023_v47 }
 0x125   :  { %791 = vst [vmem:[%s2993_s3 + $0x138] sm:$0xff] %v2354_v17  ;;  %v2374_v3 = vadd.f32 %v489_v46, %v1804_v25  ;;  %v1153_v40 = vadd.f32 %v1152_v12, %v1034_v57  ;;  %v956_v27 = vadd.f32 %v955_v18, %v1995_v37  ;;  %v1038_v1 = vmul.f32 %v2037_v53, %v2037_v53 }
 0x126   :  { %v491_v36 = vpop.f32.mrf.mxu0  ;;  %855 = vst [vmem:[%s2993_s3 + $0x338] sm:$0xff] %v2364_v21  ;;  %v2384_v31 = vadd.f32 %v681_v20, %v1804_v25  ;;  %v683_v54 = vpop.f32.mrf.mxu1  ;;  %v1222_v30 = vadd.f32 %v1221_v10, %v1035_v51  ;;  %v888_v46 = vadd.f32 %v887_v15, %v2009_v42  ;;  %v1039_v57 = vmul.f32 %v2051_v58, %v2051_v58 }
 0x127   :  { %792 = vst [vmem:[%s2993_s3 + $0x140] sm:$0xff] %v2374_v3  ;;  %v2394_v37 = vadd.f32 %v491_v36, %v1806_v26  ;;  %v1154_v12 = vadd.f32 %v1153_v40, %v1036_v35  ;;  %v957_v18 = vadd.f32 %v956_v27, %v2023_v47  ;;  %v1040_v20 = vmul.f32 %v2065_v63, %v2065_v63 }
 0x128   :  { %v495_v51 = vpop.f32.mrf.mxu0  ;;  %856 = vst [vmem:[%s2993_s3 + $0x340] sm:$0xff] %v2384_v31  ;;  %v2404_v42 = vadd.f32 %v683_v54, %v1806_v26  ;;  %v687_v10 = vpop.f32.mrf.mxu1  ;;  %v1223_v15 = vadd.f32 %v1222_v30, %v1037_v62  ;;  %v889_v36 = vadd.f32 %v888_v46, %v2037_v53  ;;  %v1041_v35 = vmul.f32 %v2079_v6, %v2079_v6 }
 0x129   :  { %793 = vst [vmem:[%s2993_s3 + $0x148] sm:$0xff] %v2394_v37  ;;  %v2414_v47 = vadd.f32 %v495_v51, %v1804_v25  ;;  %v1155_v40 = vadd.f32 %v1154_v12, %v1038_v1  ;;  %v958_v27 = vadd.f32 %v957_v18, %v2051_v58  ;;  %v1042_v54 = vmul.f32 %v2093_v11, %v2093_v11 }
 0x12a   :  { %v497_v62 = vpop.f32.mrf.mxu0  ;;  %857 = vst [vmem:[%s2993_s3 + $0x348] sm:$0xff] %v2404_v42  ;;  %v2424_v53 = vadd.f32 %v687_v10, %v1804_v25  ;;  %v689_v30 = vpop.f32.mrf.mxu1  ;;  %v1224_v46 = vadd.f32 %v1223_v15, %v1039_v57  ;;  %v890_v51 = vadd.f32 %v889_v36, %v2065_v63  ;;  %v1043_v1 = vmul.f32 %v2107_v16, %v2107_v16 }
 0x12b   :  { %794 = vst [vmem:[%s2993_s3 + $0x150] sm:$0xff] %v2414_v47  ;;  %v2434_v58 = vadd.f32 %v497_v62, %v1806_v26  ;;  %v1156_v12 = vadd.f32 %v1155_v40, %v1040_v20  ;;  %v959_v18 = vadd.f32 %v958_v27, %v2079_v6  ;;  %v1044_v10 = vmul.f32 %v2121_v22, %v2121_v22 }
 0x12c   :  { %v501_v57 = vpop.f32.mrf.mxu0  ;;  %858 = vst [vmem:[%s2993_s3 + $0x350] sm:$0xff] %v2424_v53  ;;  %v2444_v63 = vadd.f32 %v689_v30, %v1806_v26  ;;  %v693_v15 = vpop.f32.mrf.mxu1  ;;  %v1225_v36 = vadd.f32 %v1224_v46, %v1041_v35  ;;  %v891_v62 = vadd.f32 %v890_v51, %v2093_v11  ;;  %v1045_v20 = vmul.f32 %v2135_v29, %v2135_v29 }
 0x12d   :  { %795 = vst [vmem:[%s2993_s3 + $0x158] sm:$0xff] %v2434_v58  ;;  %v2454_v6 = vadd.f32 %v501_v57, %v1804_v25  ;;  %v1157_v40 = vadd.f32 %v1156_v12, %v1042_v54  ;;  %v960_v27 = vadd.f32 %v959_v18, %v2107_v16  ;;  %v1046_v30 = vmul.f32 %v2149_v38, %v2149_v38 }
 0x12e   :  { %v503_v35 = vpop.f32.mrf.mxu0  ;;  %859 = vst [vmem:[%s2993_s3 + $0x358] sm:$0xff] %v2444_v63  ;;  %v2464_v11 = vadd.f32 %v693_v15, %v1804_v25  ;;  %v695_v46 = vpop.f32.mrf.mxu1  ;;  %v1226_v51 = vadd.f32 %v1225_v36, %v1043_v1  ;;  %v892_v57 = vadd.f32 %v891_v62, %v2121_v22  ;;  %v1047_v54 = vmul.f32 %v2163_v49, %v2163_v49 }
 0x12f   :  { %796 = vst [vmem:[%s2993_s3 + $0x160] sm:$0xff] %v2454_v6  ;;  %v2474_v16 = vadd.f32 %v503_v35, %v1806_v26  ;;  %v1158_v12 = vadd.f32 %v1157_v40, %v1044_v10  ;;  %v961_v18 = vadd.f32 %v960_v27, %v2135_v29  ;;  %v1048_v15 = vmul.f32 %v2177_v59, %v2177_v59 }
 0x130   :  { %v507_v1 = vpop.f32.mrf.mxu0  ;;  %860 = vst [vmem:[%s2993_s3 + $0x360] sm:$0xff] %v2464_v11  ;;  %v2484_v22 = vadd.f32 %v695_v46, %v1806_v26  ;;  %v699_v36 = vpop.f32.mrf.mxu1  ;;  %v1227_v62 = vadd.f32 %v1226_v51, %v1045_v20  ;;  %v893_v35 = vadd.f32 %v892_v57, %v2149_v38  ;;  %v1049_v10 = vmul.f32 %v2191_v7, %v2191_v7 }
 0x131   :  { %797 = vst [vmem:[%s2993_s3 + $0x168] sm:$0xff] %v2474_v16  ;;  %v2494_v29 = vadd.f32 %v507_v1, %v1804_v25  ;;  %v1159_v40 = vadd.f32 %v1158_v12, %v1046_v30  ;;  %v962_v27 = vadd.f32 %v961_v18, %v2163_v49  ;;  %v1050_v46 = vmul.f32 %v2209_v23, %v2209_v23 }
 0x132   :  { %v509_v20 = vpop.f32.mrf.mxu0  ;;  %861 = vst [vmem:[%s2993_s3 + $0x368] sm:$0xff] %v2484_v22  ;;  %v2504_v38 = vadd.f32 %v699_v36, %v1804_v25  ;;  %v701_v51 = vpop.f32.mrf.mxu1  ;;  %v1228_v57 = vadd.f32 %v1227_v62, %v1047_v54  ;;  %v894_v1 = vadd.f32 %v893_v35, %v2177_v59  ;;  %v1051_v30 = vmul.f32 %v2233_v4, %v2233_v4 }
 0x133   :  { %798 = vst [vmem:[%s2993_s3 + $0x170] sm:$0xff] %v2494_v29  ;;  %v2514_v49 = vadd.f32 %v509_v20, %v1806_v26  ;;  %v1160_v12 = vadd.f32 %v1159_v40, %v1048_v15  ;;  %v963_v18 = vadd.f32 %v962_v27, %v2191_v7  ;;  %v1052_v36 = vmul.f32 %v2254_v32, %v2254_v32 }
 0x134   :  { %v513_v54 = vpop.f32.mrf.mxu0  ;;  %862 = vst [vmem:[%s2993_s3 + $0x370] sm:$0xff] %v2504_v38  ;;  %v2524_v59 = vadd.f32 %v701_v51, %v1806_v26  ;;  %v705_v62 = vpop.f32.mrf.mxu1  ;;  %v1229_v35 = vadd.f32 %v1228_v57, %v1049_v10  ;;  %v895_v20 = vadd.f32 %v894_v1, %v2209_v23  ;;  %v1053_v15 = vmul.f32 %v2274_v48, %v2274_v48 }
 0x135   :  { %799 = vst [vmem:[%s2993_s3 + $0x178] sm:$0xff] %v2514_v49  ;;  %v2534_v7 = vadd.f32 %v513_v54, %v1804_v25  ;;  %v1161_v40 = vadd.f32 %v1160_v12, %v1050_v46  ;;  %v964_v27 = vadd.f32 %v963_v18, %v2233_v4  ;;  %v1054_v51 = vmul.f32 %v2294_v56, %v2294_v56 }
 0x136   :  { %v515_v10 = vpop.f32.mrf.mxu0  ;;  %863 = vst [vmem:[%s2993_s3 + $0x378] sm:$0xff] %v2524_v59  ;;  %v2544_v23 = vadd.f32 %v705_v62, %v1804_v25  ;;  %v707_v57 = vpop.f32.mrf.mxu1  ;;  %v1230_v1 = vadd.f32 %v1229_v35, %v1051_v30  ;;  %v896_v54 = vadd.f32 %v895_v20, %v2254_v32  ;;  %v1055_v46 = vmul.f32 %v2314_v0, %v2314_v0 }
 0x137   :  { %800 = vst [vmem:[%s2993_s3 + $0x180] sm:$0xff] %v2534_v7  ;;  %v2554_v4 = vadd.f32 %v515_v10, %v1806_v26  ;;  %v1162_v12 = vadd.f32 %v1161_v40, %v1052_v36  ;;  %v965_v18 = vadd.f32 %v964_v27, %v2274_v48  ;;  %v1056_v62 = vmul.f32 %v2334_v9, %v2334_v9 }
 0x138   :  { %v519_v30 = vpop.f32.mrf.mxu0  ;;  %864 = vst [vmem:[%s2993_s3 + $0x380] sm:$0xff] %v2544_v23  ;;  %v2564_v32 = vadd.f32 %v707_v57, %v1806_v26  ;;  %v711_v35 = vpop.f32.mrf.mxu1  ;;  %v1231_v20 = vadd.f32 %v1230_v1, %v1053_v15  ;;  %v897_v10 = vadd.f32 %v896_v54, %v2294_v56  ;;  %v1057_v36 = vmul.f32 %v2354_v17, %v2354_v17 }
 0x139   :  { %801 = vst [vmem:[%s2993_s3 + $0x188] sm:$0xff] %v2554_v4  ;;  %v2574_v48 = vadd.f32 %v519_v30, %v1804_v25  ;;  %v1163_v40 = vadd.f32 %v1162_v12, %v1054_v51  ;;  %v966_v27 = vadd.f32 %v965_v18, %v2314_v0  ;;  %v1058_v57 = vmul.f32 %v2374_v3, %v2374_v3 }
 0x13a   :  { %v521_v15 = vpop.f32.mrf.mxu0  ;;  %865 = vst [vmem:[%s2993_s3 + $0x388] sm:$0xff] %v2564_v32  ;;  %v2584_v56 = vadd.f32 %v711_v35, %v1804_v25  ;;  %v713_v1 = vpop.f32.mrf.mxu1  ;;  %v1232_v54 = vadd.f32 %v1231_v20, %v1055_v46  ;;  %v898_v30 = vadd.f32 %v897_v10, %v2334_v9  ;;  %v1059_v51 = vmul.f32 %v2394_v37, %v2394_v37 }
 0x13b   :  { %802 = vst [vmem:[%s2993_s3 + $0x190] sm:$0xff] %v2574_v48  ;;  %v2594_v0 = vadd.f32 %v521_v15, %v1806_v26  ;;  %v1164_v12 = vadd.f32 %v1163_v40, %v1056_v62  ;;  %v967_v18 = vadd.f32 %v966_v27, %v2354_v17  ;;  %v1060_v35 = vmul.f32 %v2414_v47, %v2414_v47 }
 0x13c   :  { %v525_v46 = vpop.f32.mrf.mxu0  ;;  %866 = vst [vmem:[%s2993_s3 + $0x390] sm:$0xff] %v2584_v56  ;;  %v2604_v9 = vadd.f32 %v713_v1, %v1806_v26  ;;  %v717_v20 = vpop.f32.mrf.mxu1  ;;  %v1233_v10 = vadd.f32 %v1232_v54, %v1057_v36  ;;  %v899_v15 = vadd.f32 %v898_v30, %v2374_v3  ;;  %v1061_v62 = vmul.f32 %v2434_v58, %v2434_v58 }
 0x13d   :  { %803 = vst [vmem:[%s2993_s3 + $0x198] sm:$0xff] %v2594_v0  ;;  %v2614_v17 = vadd.f32 %v525_v46, %v1804_v25  ;;  %v1165_v40 = vadd.f32 %v1164_v12, %v1058_v57  ;;  %v968_v27 = vadd.f32 %v967_v18, %v2394_v37  ;;  %v1062_v1 = vmul.f32 %v2454_v6, %v2454_v6 }
 0x13e   :  { %v527_v36 = vpop.f32.mrf.mxu0  ;;  %867 = vst [vmem:[%s2993_s3 + $0x398] sm:$0xff] %v2604_v9  ;;  %v2624_v3 = vadd.f32 %v717_v20, %v1804_v25  ;;  %v719_v54 = vpop.f32.mrf.mxu1  ;;  %v1234_v30 = vadd.f32 %v1233_v10, %v1059_v51  ;;  %v900_v46 = vadd.f32 %v899_v15, %v2414_v47  ;;  %v1063_v57 = vmul.f32 %v2474_v16, %v2474_v16 }
 0x13f   :  { %804 = vst [vmem:[%s2993_s3 + $0x1a0] sm:$0xff] %v2614_v17  ;;  %v2634_v37 = vadd.f32 %v527_v36, %v1806_v26  ;;  %v1166_v12 = vadd.f32 %v1165_v40, %v1060_v35  ;;  %v969_v18 = vadd.f32 %v968_v27, %v2434_v58  ;;  %v1064_v20 = vmul.f32 %v2494_v29, %v2494_v29 }
 0x140   :  { %3010 = vst [vmem:[#allocation5_spill] sm:$0xff] %v2624_v3  ;;  %v531_v51 = vpop.f32.mrf.mxu0  ;;  %868 = vst [vmem:[%s2993_s3 + $0x3a0] sm:$0xff] %v2624_v3  ;;  %v2644_v47 = vadd.f32 %v719_v54, %v1806_v26  ;;  %v723_v10 = vpop.f32.mrf.mxu1  ;;  %v1235_v15 = vadd.f32 %v1234_v30, %v1061_v62  ;;  %v901_v36 = vadd.f32 %v900_v46, %v2454_v6 }
 0x141   :  { %v1065_v35 = vmul.f32 %v2514_v49, %v2514_v49  ;;  %805 = vst [vmem:[%s2993_s3 + $0x1a8] sm:$0xff] %v2634_v37  ;;  %v532_v58 = vadd.f32 %v531_v51, %v1804_v25  ;;  %v1167_v40 = vadd.f32 %v1166_v12, %v1062_v1  ;;  %v970_v27 = vadd.f32 %v969_v18, %v2474_v16 }
 0x142   :  { %v1066_v54 = vmul.f32 %v2534_v7, %v2534_v7  ;;  %v533_v3 = vpop.f32.mrf.mxu0  ;;  %869 = vst [vmem:[%s2993_s3 + $0x3a8] sm:$0xff] %v2644_v47  ;;  %v2662_v6 = vadd.f32 %v723_v10, %v1804_v25  ;;  %v725_v62 = vpop.f32.mrf.mxu1  ;;  %v1236_v30 = vadd.f32 %v1235_v15, %v1063_v57  ;;  %v902_v46 = vadd.f32 %v901_v36, %v2494_v29 }
 0x143   :  { %v1067_v1 = vmul.f32 %v2554_v4, %v2554_v4  ;;  %806 = vst [vmem:[%s2993_s3 + $0x1b0] sm:$0xff] %v532_v58  ;;  %v534_v16 = vadd.f32 %v533_v3, %v1806_v26  ;;  %v1168_v12 = vadd.f32 %v1167_v40, %v1064_v20  ;;  %v971_v18 = vadd.f32 %v970_v27, %v2514_v49 }
 0x144   :  { %3011 = vst [vmem:[#allocation6_spill] sm:$0xff] %v2662_v6  ;;  %v1068_v51 = vmul.f32 %v2574_v48, %v2574_v48  ;;  %v537_v10 = vpop.f32.mrf.mxu0  ;;  %870 = vst [vmem:[%s2993_s3 + $0x3b0] sm:$0xff] %v2662_v6  ;;  %v2679_v29 = vadd.f32 %v725_v62, %v1806_v26  ;;  %v729_v57 = vpop.f32.mrf.mxu1  ;;  %v1237_v15 = vadd.f32 %v1236_v30, %v1065_v35 }
 0x145   :  { %v903_v36 = vadd.f32 %v902_v46, %v2534_v7  ;;  %v1069_v3 = vmul.f32 %v2594_v0, %v2594_v0  ;;  %807 = vst [vmem:[%s2993_s3 + $0x1b8] sm:$0xff] %v534_v16  ;;  %v538_v49 = vadd.f32 %v537_v10, %v1804_v25  ;;  %v1169_v20 = vadd.f32 %v1168_v12, %v1066_v54 }
 0x146   :  { %3012 = vst [vmem:[#allocation7_spill] sm:$0xff] %v2679_v29  ;;  %v972_v40 = vadd.f32 %v971_v18, %v2554_v4  ;;  %v1070_v27 = vmul.f32 %v2614_v17, %v2614_v17  ;;  %v539_v62 = vpop.f32.mrf.mxu0  ;;  %871 = vst [vmem:[%s2993_s3 + $0x3b8] sm:$0xff] %v2679_v29  ;;  %v2696_v7 = vadd.f32 %v729_v57, %v1804_v25  ;;  %v731_v35 = vpop.f32.mrf.mxu1 }
 0x147   :  { %v1238_v30 = vadd.f32 %v1237_v15, %v1067_v1  ;;  %v904_v46 = vadd.f32 %v903_v36, %v2574_v48  ;;  %v1071_v54 = vmul.f32 %v2634_v37, %v2634_v37  ;;  %808 = vst [vmem:[%s2993_s3 + $0x1c0] sm:$0xff] %v538_v49  ;;  %v540_v4 = vadd.f32 %v539_v62, %v1806_v26 }
 0x148   :  { %v1170_v12 = vadd.f32 %v1169_v20, %v1068_v51  ;;  %v1072_v18 = vmul.f32 %v532_v58, %v532_v58  ;;  %v543_v10 = vpop.f32.mrf.mxu0  ;;  %872 = vst [vmem:[%s2993_s3 + $0x3c0] sm:$0xff] %v2696_v7  ;;  %v2710_v1 = vadd.f32 %v731_v35, %v1806_v26  ;;  %v735_v48 = vpop.f32.mrf.mxu1  ;;  %v973_v57 = vadd.f32 %v972_v40, %v2594_v0 }
 0x149   :  { %v1239_v15 = vadd.f32 %v1238_v30, %v1069_v3  ;;  %v905_v36 = vadd.f32 %v904_v46, %v2614_v17  ;;  %809 = vst [vmem:[%s2993_s3 + $0x1c8] sm:$0xff] %v540_v4  ;;  %v544_v51 = vadd.f32 %v543_v10, %v1804_v25  ;;  %v1073_v62 = vmul.f32 %v534_v16, %v534_v16 }
 0x14a   :  { %v1171_v20 = vadd.f32 %v1170_v12, %v1070_v27  ;;  %v1074_v29 = vmul.f32 %v538_v49, %v538_v49  ;;  %v545_v6 = vpop.f32.mrf.mxu0  ;;  %873 = vst [vmem:[%s2993_s3 + $0x3c8] sm:$0xff] %v2710_v1  ;;  %v2723_v0 = vadd.f32 %v735_v48, %v1804_v25  ;;  %v737_v3 = vpop.f32.mrf.mxu1  ;;  %v974_v17 = vadd.f32 %v973_v57, %v2634_v37 }
 0x14b   :  { %v1240_v40 = vadd.f32 %v1239_v15, %v1071_v54  ;;  %v906_v35 = vadd.f32 %v905_v36, %v532_v58  ;;  %810 = vst [vmem:[%s2993_s3 + $0x1d0] sm:$0xff] %v544_v51  ;;  %v546_v27 = vadd.f32 %v545_v6, %v1806_v26  ;;  %v1075_v46 = vmul.f32 %v540_v4, %v540_v4 }
 0x14c   :  { %v1172_v30 = vadd.f32 %v1171_v20, %v1072_v18  ;;  %v1076_v12 = vmul.f32 %v544_v51, %v544_v51  ;;  %v549_v10 = vpop.f32.mrf.mxu0  ;;  %874 = vst [vmem:[%s2993_s3 + $0x3d0] sm:$0xff] %v2723_v0  ;;  %v2735_v48 = vadd.f32 %v737_v3, %v1806_v26  ;;  %v741_v37 = vpop.f32.mrf.mxu1  ;;  %v975_v58 = vadd.f32 %v974_v17, %v534_v16 }
 0x14d   :  { %v907_v54 = vadd.f32 %v906_v35, %v538_v49  ;;  %811 = vst [vmem:[%s2993_s3 + $0x1d8] sm:$0xff] %v546_v27  ;;  %v550_v6 = vadd.f32 %v549_v10, %v1804_v25  ;;  %v1241_v18 = vadd.f32 %v1240_v40, %v1073_v62  ;;  %v1077_v15 = vmul.f32 %v546_v27, %v546_v27 }
 0x14e   :  { %v1173_v57 = vadd.f32 %v1172_v30, %v1074_v29  ;;  %v551_v36 = vpop.f32.mrf.mxu0  ;;  %875 = vst [vmem:[%s2993_s3 + $0x3d8] sm:$0xff] %v2735_v48  ;;  %v2746_v20 = vadd.f32 %v741_v37, %v1804_v25  ;;  %v743_v16 = vpop.f32.mrf.mxu1  ;;  %v976_v49 = vadd.f32 %v975_v58, %v540_v4 }
 0x14f   :  { %v908_v3 = vadd.f32 %v907_v54, %v544_v51  ;;  %812 = vst [vmem:[%s2993_s3 + $0x1e0] sm:$0xff] %v550_v6  ;;  %v1078_v17 = vmul.f32 %v550_v6, %v550_v6  ;;  %v552_v29 = vadd.f32 %v551_v36, %v1806_v26  ;;  %v1242_v62 = vadd.f32 %v1241_v18, %v1075_v46 }
 0x150   :  { %v1174_v40 = vadd.f32 %v1173_v57, %v1076_v12  ;;  %v555_v35 = vpop.f32.mrf.mxu0  ;;  %876 = vst [vmem:[%s2993_s3 + $0x3e0] sm:$0xff] %v2746_v20  ;;  %v2757_v30 = vadd.f32 %v743_v16, %v1806_v26  ;;  %v747_v4 = vpop.f32.mrf.mxu1  ;;  %v977_v51 = vadd.f32 %v976_v49, %v546_v27  ;;  %v1383_v16 = vld [vmem:[%s2993_s3 + $0x200] sm:$0xff] }
 0x151   :  { %v909_v10 = vadd.f32 %v908_v3, %v550_v6  ;;  %813 = vst [vmem:[%s2993_s3 + $0x1e8] sm:$0xff] %v552_v29  ;;  %v1079_v37 = vmul.f32 %v552_v29, %v552_v29  ;;  %v556_v46 = vadd.f32 %v555_v35, %v1804_v25  ;;  %v1243_v12 = vadd.f32 %v1242_v62, %v1077_v15  ;;  %v1384_v35 = vld [vmem:[%s2993_s3 + $0x208] sm:$0xff] }
 0x152   :  { %v1175_v58 = vadd.f32 %v1174_v40, %v1078_v17  ;;  %v557_v54 = vpop.f32.mrf.mxu0  ;;  %877 = vst [vmem:[%s2993_s3 + $0x3e8] sm:$0xff] %v2757_v30  ;;  %v2768_v18 = vadd.f32 %v747_v4, %v1804_v25  ;;  %v749_v27 = vpop.f32.mrf.mxu1  ;;  %v978_v6 = vadd.f32 %v977_v51, %v552_v29  ;;  %v1082_v49 = vmul.f32 %v1383_v16, %v1383_v16  ;;  %v1385_v51 = vld [vmem:[%s2993_s3 + $0x210] sm:$0xff] }
 0x153   :  { %814 = vst [vmem:[%s2993_s3 + $0x1f0] sm:$0xff] %v556_v46  ;;  %v910_v57 = vadd.f32 %v909_v10, %v556_v46  ;;  %v1080_v36 = vmul.f32 %v556_v46, %v556_v46  ;;  %v558_v15 = vadd.f32 %v557_v54, %v1806_v26  ;;  %v1244_v3 = vadd.f32 %v1243_v12, %v1079_v37 }
 0x154   :  { %878 = vst [vmem:[%s2993_s3 + $0x3f0] sm:$0xff] %v2768_v18  ;;  %v2782_v25 = vadd.f32 %v749_v27, %v1806_v26  ;;  %v1083_v4 = vmul.f32 %v1384_v35, %v1384_v35  ;;  %v1084_v10 = vmul.f32 %v1385_v51, %v1385_v51  ;;  %v1387_v27 = vld [vmem:[%s2993_s3 + $0x220] sm:$0xff] }
 0x155   :  { %v911_v17 = vadd.f32 %v1383_v16, %v910_v57  ;;  %v1176_v29 = vadd.f32 %v1175_v58, %v1080_v36  ;;  %815 = vst [vmem:[%s2993_s3 + $0x1f8] sm:$0xff] %v558_v15  ;;  %v979_v62 = vadd.f32 %v978_v6, %v558_v15  ;;  %v1081_v40 = vmul.f32 %v558_v15, %v558_v15  ;;  %v1386_v58 = vld [vmem:[%s2993_s3 + $0x218] sm:$0xff] }
 0x156   :  { %879 = vst [vmem:[%s2993_s3 + $0x3f8] sm:$0xff] %v2782_v25  ;;  %v1085_v54 = vmul.f32 %v1386_v58, %v1386_v58  ;;  %v1086_v6 = vmul.f32 %v1387_v27, %v1387_v27 }
 0x157   :  { %v912_v26 = vadd.f32 %v1385_v51, %v911_v17  ;;  %v1177_v37 = vadd.f32 %v1176_v29, %v1082_v49  ;;  %v980_v46 = vadd.f32 %v1384_v35, %v979_v62  ;;  %v1245_v12 = vadd.f32 %v1244_v3, %v1081_v40  ;;  %v1388_v49 = vld [vmem:[%s2993_s3 + $0x228] sm:$0xff]  ;;  %v1389_v3 = vld [vmem:[%s2993_s3 + $0x230] sm:$0xff] }
 0x158   :  { %v1087_v17 = vmul.f32 %v1388_v49, %v1388_v49  ;;  %v1088_v29 = vmul.f32 %v1389_v3, %v1389_v3 }
 0x159   :  { %v913_v57 = vadd.f32 %v1387_v27, %v912_v26  ;;  %v1178_v36 = vadd.f32 %v1177_v37, %v1084_v10  ;;  %v981_v15 = vadd.f32 %v1386_v58, %v980_v46  ;;  %v1246_v16 = vadd.f32 %v1245_v12, %v1083_v4  ;;  %v1390_v10 = vld [vmem:[%s2993_s3 + $0x238] sm:$0xff]  ;;  %v1391_v4 = vld [vmem:[%s2993_s3 + $0x240] sm:$0xff] }
 0x15a   :  { %v1089_v26 = vmul.f32 %v1390_v10, %v1390_v10  ;;  %v1090_v37 = vmul.f32 %v1391_v4, %v1391_v4 }
 0x15b   :  { %v914_v62 = vadd.f32 %v1389_v3, %v913_v57  ;;  %v1179_v40 = vadd.f32 %v1178_v36, %v1086_v6  ;;  %v982_v35 = vadd.f32 %v1388_v49, %v981_v15  ;;  %v1247_v51 = vadd.f32 %v1246_v16, %v1085_v54  ;;  %v1392_v6 = vld [vmem:[%s2993_s3 + $0x248] sm:$0xff]  ;;  %v1393_v54 = vld [vmem:[%s2993_s3 + $0x250] sm:$0xff] }
 0x15c   :  { %v1091_v57 = vmul.f32 %v1392_v6, %v1392_v6  ;;  %v1092_v36 = vmul.f32 %v1393_v54, %v1393_v54 }
 0x15d   :  { %v915_v46 = vadd.f32 %v1391_v4, %v914_v62  ;;  %v1180_v12 = vadd.f32 %v1179_v40, %v1088_v29  ;;  %v983_v58 = vadd.f32 %v1390_v10, %v982_v35  ;;  %v1248_v27 = vadd.f32 %v1247_v51, %v1087_v17  ;;  %v1394_v29 = vld [vmem:[%s2993_s3 + $0x258] sm:$0xff]  ;;  %v1395_v17 = vld [vmem:[%s2993_s3 + $0x260] sm:$0xff] }
 0x15e   :  { %v1093_v62 = vmul.f32 %v1394_v29, %v1394_v29  ;;  %v1094_v40 = vmul.f32 %v1395_v17, %v1395_v17 }
 0x15f   :  { %v916_v15 = vadd.f32 %v1393_v54, %v915_v46  ;;  %v1181_v16 = vadd.f32 %v1180_v12, %v1090_v37  ;;  %v984_v49 = vadd.f32 %v1392_v6, %v983_v58  ;;  %v1249_v3 = vadd.f32 %v1248_v27, %v1089_v26  ;;  %v1396_v37 = vld [vmem:[%s2993_s3 + $0x268] sm:$0xff]  ;;  %v1397_v26 = vld [vmem:[%s2993_s3 + $0x270] sm:$0xff] }
 0x160   :  { %v1095_v46 = vmul.f32 %v1396_v37, %v1396_v37  ;;  %v1096_v12 = vmul.f32 %v1397_v26, %v1397_v26 }
 0x161   :  { %v917_v35 = vadd.f32 %v1395_v17, %v916_v15  ;;  %v1182_v51 = vadd.f32 %v1181_v16, %v1092_v36  ;;  %v985_v10 = vadd.f32 %v1394_v29, %v984_v49  ;;  %v1250_v4 = vadd.f32 %v1249_v3, %v1091_v57  ;;  %v1398_v36 = vld [vmem:[%s2993_s3 + $0x278] sm:$0xff]  ;;  %v1399_v29 = vld [vmem:[%s2993_s3 + $0x280] sm:$0xff] }
 0x162   :  { %v1097_v15 = vmul.f32 %v1398_v36, %v1398_v36  ;;  %v1098_v57 = vmul.f32 %v1988_v34, %v1988_v34  ;;  %v1400_v34 = vld [vmem:[%s2993_s3 + $0x288] sm:$0xff] }
 0x163   :  { %v918_v58 = vadd.f32 %v1397_v26, %v917_v35  ;;  %v1183_v27 = vadd.f32 %v1182_v51, %v1094_v40  ;;  %v986_v6 = vadd.f32 %v1396_v37, %v985_v10  ;;  %v1251_v54 = vadd.f32 %v1250_v4, %v1093_v62 }
 0x164   :  { %v1099_v40 = vmul.f32 %v2002_v39, %v2002_v39  ;;  %v1100_v62 = vmul.f32 %v2016_v45, %v2016_v45  ;;  %v1101_v37 = vmul.f32 %v2030_v50, %v2030_v50 }
 0x165   :  { %v1184_v16 = vadd.f32 %v1183_v27, %v1096_v12  ;;  %v987_v49 = vadd.f32 %v1398_v36, %v986_v6  ;;  %v1252_v3 = vadd.f32 %v1251_v54, %v1095_v46  ;;  %v919_v17 = vadd.f32 %v1399_v29, %v918_v58 }
 0x166   :  { %v1102_v46 = vmul.f32 %v2044_v55, %v2044_v55  ;;  %v1104_v27 = vmul.f32 %v2072_v2, %v2072_v2  ;;  %v1107_v29 = vmul.f32 %v2114_v19, %v2114_v19 }
 0x167   :  { %v1253_v35 = vadd.f32 %v1252_v3, %v1097_v15  ;;  %v920_v51 = vadd.f32 %v919_v17, %v2016_v45  ;;  %v1185_v10 = vadd.f32 %v1184_v16, %v1098_v57  ;;  %v988_v4 = vadd.f32 %v1400_v34, %v987_v49 }
 0x168   :  { %v1103_v45 = vmul.f32 %v2058_v61, %v2058_v61  ;;  %v1105_v57 = vmul.f32 %v2086_v8, %v2086_v8 }
 0x169   :  { %v921_v39 = vadd.f32 %v920_v51, %v2044_v55  ;;  %v1186_v26 = vadd.f32 %v1185_v10, %v1100_v62  ;;  %v989_v12 = vadd.f32 %v988_v4, %v2030_v50  ;;  %v1254_v58 = vadd.f32 %v1253_v35, %v1099_v40  ;;  %v3013_v4 = vld [vmem:[#allocation2_spill] sm:$0xff] }
 0x16a   :  { %v1106_v55 = vmul.f32 %v2100_v14, %v2100_v14  ;;  %v1109_v35 = vmul.f32 %v2142_v33, %v2142_v33 }
 0x16b   :  { %v922_v6 = vadd.f32 %v921_v39, %v2072_v2  ;;  %v1187_v54 = vadd.f32 %v1186_v26, %v1102_v46  ;;  %v990_v36 = vadd.f32 %v989_v12, %v2058_v61  ;;  %v1255_v15 = vadd.f32 %v1254_v58, %v1101_v37  ;;  %v3015_v58 = vld [vmem:[#allocation4_spill] sm:$0xff] }
 0x16c   :  { %v1108_v2 = vmul.f32 %v2128_v24, %v2128_v24  ;;  %v1111_v37 = vmul.f32 %v3013_v4, %v3013_v4 }
 0x16d   :  { %v923_v50 = vadd.f32 %v922_v6, %v2100_v14  ;;  %v1188_v16 = vadd.f32 %v1187_v54, %v1104_v27  ;;  %v991_v49 = vadd.f32 %v990_v36, %v2086_v8  ;;  %v1256_v3 = vadd.f32 %v1255_v15, %v1103_v45 }
 0x16e   :  { %v1110_v14 = vmul.f32 %v2156_v43, %v2156_v43  ;;  %v1113_v45 = vmul.f32 %v3015_v58, %v3015_v58  ;;  %v1115_v36 = vmul.f32 %v2244_v28, %v2244_v28  ;;  %v1116_v15 = vmul.f32 %v2264_v44, %v2264_v44 }
 0x16f   :  { %v924_v61 = vadd.f32 %v923_v50, %v2128_v24  ;;  %v1189_v17 = vadd.f32 %v1188_v16, %v1106_v55  ;;  %v992_v40 = vadd.f32 %v991_v49, %v2114_v19  ;;  %v1257_v62 = vadd.f32 %v1256_v3, %v1105_v57  ;;  %v3014_v24 = vld [vmem:[#allocation3_spill] sm:$0xff] }
 0x170   :  { %v1112_v46 = vmul.f32 %v3014_v24, %v3014_v24  ;;  %v1117_v49 = vmul.f32 %v2284_v52, %v2284_v52 }
 0x171   :  { %v925_v8 = vadd.f32 %v924_v61, %v2156_v43  ;;  %v1190_v51 = vadd.f32 %v1189_v17, %v1108_v2  ;;  %v993_v10 = vadd.f32 %v992_v40, %v2142_v33  ;;  %v1258_v34 = vadd.f32 %v1257_v62, %v1107_v29 }
 0x172   :  { %v1114_v43 = vmul.f32 %v2220_v41, %v2220_v41  ;;  %v1119_v17 = vmul.f32 %v2324_v5, %v2324_v5 }
 0x173   :  { %v926_v19 = vadd.f32 %v925_v8, %v3014_v24  ;;  %v1191_v39 = vadd.f32 %v1190_v51, %v1110_v14  ;;  %v994_v26 = vadd.f32 %v993_v10, %v3013_v4  ;;  %v1259_v12 = vadd.f32 %v1258_v34, %v1109_v35 }
 0x174   :  { %v1121_v14 = vmul.f32 %v2364_v21, %v2364_v21  ;;  %v1123_v34 = vmul.f32 %v2404_v42, %v2404_v42 }
 0x175   :  { %v927_v33 = vadd.f32 %v926_v19, %v2220_v41  ;;  %v1192_v27 = vadd.f32 %v1191_v39, %v1112_v46  ;;  %v995_v6 = vadd.f32 %v994_v26, %v3015_v58  ;;  %v1260_v54 = vadd.f32 %v1259_v12, %v1111_v37 }
 0x176   :  { %v1118_v41 = vmul.f32 %v2304_v60, %v2304_v60  ;;  %v1125_v46 = vmul.f32 %v2444_v63, %v2444_v63  ;;  %v1127_v12 = vmul.f32 %v2484_v22, %v2484_v22 }
 0x177   :  { %v1193_v57 = vadd.f32 %v1192_v27, %v1114_v43  ;;  %v996_v55 = vadd.f32 %v995_v6, %v2244_v28  ;;  %v1261_v50 = vadd.f32 %v1260_v54, %v1113_v45  ;;  %v928_v16 = vadd.f32 %v927_v33, %v2264_v44 }
 0x178   :  { %v1120_v28 = vmul.f32 %v2344_v13, %v2344_v13  ;;  %v1129_v33 = vmul.f32 %v2524_v59, %v2524_v59 }
 0x179   :  { %v1262_v3 = vadd.f32 %v1261_v50, %v1115_v36  ;;  %v1194_v29 = vadd.f32 %v1193_v57, %v1116_v15  ;;  %v997_v2 = vadd.f32 %v996_v55, %v2284_v52  ;;  %v929_v61 = vadd.f32 %v928_v16, %v2304_v60  ;;  %v3016_v16 = vld [vmem:[#allocation5_spill] sm:$0xff] }
 0x17a   :  { %v1122_v52 = vmul.f32 %v2384_v31, %v2384_v31  ;;  %v1131_v36 = vmul.f32 %v2564_v32, %v2564_v32  ;;  %v1133_v50 = vmul.f32 %v2604_v9, %v2604_v9 }
 0x17b   :  { %v1263_v40 = vadd.f32 %v1262_v3, %v1117_v49  ;;  %v1195_v44 = vadd.f32 %v1194_v29, %v1118_v41  ;;  %v998_v62 = vadd.f32 %v997_v2, %v2324_v5  ;;  %v930_v35 = vadd.f32 %v929_v61, %v2344_v13  ;;  %v3017_v2 = vld [vmem:[#allocation6_spill] sm:$0xff] }
 0x17c   :  { %v1124_v5 = vmul.f32 %v2424_v53, %v2424_v53  ;;  %v1135_v29 = vmul.f32 %v2644_v47, %v2644_v47 }
 0x17d   :  { %v1264_v8 = vadd.f32 %v1263_v40, %v1119_v17  ;;  %v1196_v60 = vadd.f32 %v1195_v44, %v1120_v28  ;;  %v999_v51 = vadd.f32 %v998_v62, %v2364_v21  ;;  %v931_v10 = vadd.f32 %v930_v35, %v2384_v31  ;;  %v3018_v40 = vld [vmem:[#allocation7_spill] sm:$0xff] }
 0x17e   :  { %v1126_v21 = vmul.f32 %v2464_v11, %v2464_v11  ;;  %v1137_v44 = vmul.f32 %v3018_v40, %v3018_v40 }
 0x17f   :  { %v1265_v4 = vadd.f32 %v1264_v8, %v1121_v14  ;;  %v1197_v13 = vadd.f32 %v1196_v60, %v1122_v52  ;;  %v1000_v37 = vadd.f32 %v999_v51, %v2404_v42  ;;  %v932_v24 = vadd.f32 %v931_v10, %v2424_v53 }
 0x180   :  { %v1128_v42 = vmul.f32 %v2504_v38, %v2504_v38  ;;  %v1139_v8 = vmul.f32 %v2710_v1, %v2710_v1 }
 0x181   :  { %v1266_v19 = vadd.f32 %v1265_v4, %v1123_v34  ;;  %v1198_v31 = vadd.f32 %v1197_v13, %v1124_v5  ;;  %v1001_v39 = vadd.f32 %v1000_v37, %v2444_v63  ;;  %v933_v26 = vadd.f32 %v932_v24, %v2464_v11 }
 0x182   :  { %v1130_v63 = vmul.f32 %v2544_v23, %v2544_v23  ;;  %v1141_v5 = vmul.f32 %v2735_v48, %v2735_v48  ;;  %v1142_v4 = vmul.f32 %v2746_v20, %v2746_v20 }
 0x183   :  { %v1267_v58 = vadd.f32 %v1266_v19, %v1125_v46  ;;  %v1199_v53 = vadd.f32 %v1198_v31, %v1126_v21  ;;  %v1002_v45 = vadd.f32 %v1001_v39, %v2484_v22  ;;  %v934_v43 = vadd.f32 %v933_v26, %v2504_v38 }
 0x184   :  { %v1132_v22 = vmul.f32 %v2584_v56, %v2584_v56  ;;  %v1145_v39 = vmul.f32 %v2782_v25, %v2782_v25 }
 0x185   :  { %v1268_v27 = vadd.f32 %v1267_v58, %v1127_v12  ;;  %v1200_v11 = vadd.f32 %v1199_v53, %v1128_v42  ;;  %v1003_v6 = vadd.f32 %v1002_v45, %v2524_v59  ;;  %v935_v54 = vadd.f32 %v934_v43, %v2544_v23 }
 0x186   :  { %v1134_v59 = vmul.f32 %v3016_v16, %v3016_v16 }
 0x187   :  { %v1269_v15 = vadd.f32 %v1268_v27, %v1129_v33  ;;  %v1201_v38 = vadd.f32 %v1200_v11, %v1130_v63  ;;  %v1004_v57 = vadd.f32 %v1003_v6, %v2564_v32  ;;  %v936_v55 = vadd.f32 %v935_v54, %v2584_v56 }
 0x188   :  { %v1136_v32 = vmul.f32 %v3017_v2, %v3017_v2 }
 0x189   :  { %v1270_v49 = vadd.f32 %v1269_v15, %v1131_v36  ;;  %v1202_v23 = vadd.f32 %v1201_v38, %v1132_v22  ;;  %v1005_v41 = vadd.f32 %v1004_v57, %v2604_v9  ;;  %v937_v3 = vadd.f32 %v936_v55, %v3016_v16 }
 0x18a   :  { %v1138_v9 = vmul.f32 %v2696_v7, %v2696_v7 }
 0x18b   :  { %v1271_v61 = vadd.f32 %v1270_v49, %v1133_v50  ;;  %v1203_v56 = vadd.f32 %v1202_v23, %v1134_v59  ;;  %v1006_v17 = vadd.f32 %v1005_v41, %v2644_v47  ;;  %v938_v28 = vadd.f32 %v937_v3, %v3017_v2 }
 0x18c   :  { %v1140_v47 = vmul.f32 %v2723_v0, %v2723_v0 }
 0x18d   :  { %v1272_v62 = vadd.f32 %v1271_v61, %v1135_v29  ;;  %v1204_v35 = vadd.f32 %v1203_v56, %v1136_v32  ;;  %v1007_v14 = vadd.f32 %v1006_v17, %v3018_v40  ;;  %v939_v52 = vadd.f32 %v938_v28, %v2696_v7 }
 0x18e   :  { %v1144_v7 = vmul.f32 %v2768_v18, %v2768_v18 }
 0x18f   :  { %v1273_v60 = vadd.f32 %v1272_v62, %v1137_v44  ;;  %v1205_v51 = vadd.f32 %v1204_v35, %v1138_v9  ;;  %v1008_v10 = vadd.f32 %v1007_v14, %v2710_v1  ;;  %v940_v34 = vadd.f32 %v939_v52, %v2723_v0 }
 0x190   :  { %v1143_v1 = vmul.f32 %v2757_v30, %v2757_v30 }
 0x191   :  { %v1274_v13 = vadd.f32 %v1273_v60, %v1139_v8  ;;  %v1206_v37 = vadd.f32 %v1205_v51, %v1140_v47  ;;  %v1009_v24 = vadd.f32 %v1008_v10, %v2735_v48  ;;  %v941_v46 = vadd.f32 %v940_v34, %v2746_v20 }
 0x193   :  { %v1275_v21 = vadd.f32 %v1274_v13, %v1141_v5  ;;  %v1207_v0 = vadd.f32 %v1206_v37, %v1142_v4  ;;  %v1010_v19 = vadd.f32 %v1009_v24, %v2757_v30  ;;  %v942_v31 = vadd.f32 %v941_v46, %v2768_v18 }
 0x195   :  { %v1276_v26 = vadd.f32 %v1275_v21, %v1143_v1  ;;  %v943_v12 = vrot.slane %v942_v31, 4  ;;  %v1208_v42 = vadd.f32 %v1207_v0, %v1144_v7  ;;  %v1011_v58 = vadd.f32 %v1010_v19, %v2782_v25 }
 0x197   :  { %v944_v48 = vadd.f32 %v943_v12, %v942_v31  ;;  %v1209_v53 = vrot.slane %v1208_v42, 4  ;;  %v1012_v20 = vrot.slane %v1011_v58, 4  ;;  %v1277_v45 = vadd.f32 %v1276_v26, %v1145_v39 }
 0x199   :  { %v945_v43 = vrot.slane %v944_v48, 2  ;;  %v1210_v33 = vadd.f32 %v1209_v53, %v1208_v42  ;;  %v1013_v63 = vadd.f32 %v1012_v20, %v1011_v58  ;;  %v1278_v27 = vrot.slane %v1277_v45, 4 }
 0x19b   :  { %v946_v11 = vadd.f32 %v945_v43, %v944_v48  ;;  %v1211_v30 = vrot.slane %v1210_v33, 2  ;;  %v1014_v6 = vrot.slane %v1013_v63, 2  ;;  %v1279_v18 = vadd.f32 %v1278_v27, %v1277_v45 }
 0x19d   :  { %v947_v54 = vrot.slane %v946_v11, 1  ;;  %v1212_v36 = vadd.f32 %v1211_v30, %v1210_v33  ;;  %v1015_v22 = vadd.f32 %v1014_v6, %v1013_v63  ;;  %v1280_v15 = vrot.slane %v1279_v18, 2 }
 0x19f   :  { %v1213_v38 = vrot.slane %v1212_v36, 1  ;;  %v1016_v57 = vrot.slane %v1015_v22, 1  ;;  %v1281_v55 = vadd.f32 %v1280_v15, %v1279_v18  ;;  %v948_v25 = vadd.f32 %v947_v54, %v946_v11 }
 0x1a1   :  { %v1214_v50 = vadd.f32 %v1213_v38, %v1212_v36  ;;  %v1282_v16 = vrot.slane %v1281_v55, 1  ;;  %v1017_v49 = vadd.f32 %v1016_v57, %v1015_v22 }
 0x1a3   :  { %v1285_v59 = vsel %vm1284_vm1, %v948_v25, %v1214_v50  ;;  %v1283_v23 = vadd.f32 %v1282_v16, %v1281_v55 }
 0x1a4   :  { %v1288_v41 = vsel %vm1287_vm2, %v1285_v59, 0.0 }
 0x1a5   :  { %1290 = vst [vmem:[%s2994_s4] sm:$0xff] %v1288_v41  ;;  %v1286_v3 = vsel %vm1284_vm1, %v1017_v49, %v1283_v23 }
 0x1a6   :  { %v1289_v29 = vsel %vm1287_vm2, %v1286_v3, 0.0 }
 0x1a7   :  { %1291 = vst [vmem:[%s2994_s4 + $0x8] sm:$0xff] %v1289_v29 }

</bundles_post_ra>
